<compile_context>
chip_gen: v7x
topology: tpu7x:2x2x1
jax: 0.10.0
libtpu: 0.0.40
codegen_flags: <defaults>
</compile_context>

<pallas_src>
import functools
import math

import jax
import jax.numpy as jnp
from jax.experimental import pallas as pl
from jax.experimental.pallas import tpu as pltpu


def net_kernel(pack_ref, w34_ref, wpack_hbm_ref, out_ref, wbuf, wsem,
               *, num_layers, seq_len, batch, hidden):
    L, N, H = seq_len, batch, hidden
    eps = 1e-5

    # pack layout (rows):
    #   [0        : N*L      ]  shifted conv windows, taps in lanes 0..2
    #   [N*L      : N*L+8*lyr]  per-layer vectors (inb_q,inb_k,inb_v,ob,b1,b2,g,b)
    #   [conv_base: conv_base+4] conv taps (3 rows) + conv bias (1 row)
    #   [b34_row]               folded final bias in lanes 0..1
    vec_base = N * L
    conv_base = vec_base + 8 * num_layers
    b34_row = conv_base + 4

    def fetch(layer, slot):
        pltpu.make_async_copy(wpack_hbm_ref.at[layer], wbuf.at[slot],
                              wsem.at[slot]).start()

    # Prime layer 0's weights; the DMA overlaps the conv below.
    fetch(0, 0)

    xwin = pack_ref[0:vec_base, :]                    # (N*L, H)
    convp = pack_ref[conv_base:conv_base + 4, :]      # (4, H)
    b34 = pack_ref[b34_row:b34_row + 1, 0:2]          # (1, 2)

    # Conv1d(1, H, kernel_size=3, padding=1), built directly in (N*L, H).
    x = (xwin[:, 0:1] * convp[0:1, :]
         + xwin[:, 1:2] * convp[1:2, :]
         + xwin[:, 2:3] * convp[2:3, :]
         + convp[3:4, :])                             # (N*L, H)

    def layer_norm(t, g, b):
        mu = jnp.mean(t, axis=-1, keepdims=True)
        var = jnp.mean((t - mu) ** 2, axis=-1, keepdims=True)
        return (t - mu) * jax.lax.rsqrt(var + eps) * g + b

    def batch_shift(t, d):
        # row n*L + l  ->  row ((n+d) % N)*L + l   (tile-aligned halves swap)
        if d == 0:
            return t
        return jnp.concatenate([t[d * L:, :], t[:d * L, :]], axis=0)

    for l in range(num_layers):            # static (unrolled) layer loop
        slot = l % 2
        if l + 1 < num_layers:             # prefetch next layer's weights
            fetch(l + 1, 1 - slot)
        pltpu.make_async_copy(wpack_hbm_ref.at[l], wbuf.at[slot],
                              wsem.at[slot]).wait()

        vec = pack_ref[vec_base + 8 * l: vec_base + 8 * (l + 1), :]  # (8, H)
        inw = wbuf[slot, :, 0:3 * H].astype(jnp.float32)             # (H, 3H)
        ow = wbuf[slot, :, 3 * H:4 * H].astype(jnp.float32)          # (H, H)
        w1 = wbuf[slot, :, 4 * H:5 * H].astype(jnp.float32)          # (H, H)
        w2 = wbuf[slot, :, 5 * H:6 * H].astype(jnp.float32)          # (H, H)

        # ---- self attention (single head, attends over the batch axis) ----
        residual = x
        qkv = jnp.dot(x, inw, preferred_element_type=jnp.float32)    # (NL,3H)
        q = qkv[:, 0:H] + vec[0:1, :]       # 1/sqrt(H) already folded into q
        k = qkv[:, H:2 * H] + vec[1:2, :]
        v = qkv[:, 2 * H:3 * H] + vec[2:3, :]

        # Full-tile scores over the tiny batch axis: mul + lane reduce.
        s = [jnp.sum(q * batch_shift(k, d), axis=-1, keepdims=True)
             for d in range(N)]                                      # (NL, 1)
        mx = functools.reduce(jnp.maximum, s)
        e = [jnp.exp(sv - mx) for sv in s]
        rcp = pl.reciprocal(functools.reduce(jnp.add, e), approx=True)
        attn = functools.reduce(
            jnp.add, [(e[d] * rcp) * batch_shift(v, d) for d in range(N)])

        attn = (jnp.dot(attn, ow, preferred_element_type=jnp.float32)
                + vec[3:4, :])
        x = layer_norm(residual + attn, vec[6:7, :], vec[7:8, :])

        # ---- feed-forward ----
        residual = x
        h1 = jnp.dot(x, w1, preferred_element_type=jnp.float32) + vec[4:5, :]
        h1 = jnp.maximum(h1, 0.0)
        h2 = jnp.dot(h1, w2, preferred_element_type=jnp.float32) + vec[5:6, :]
        x = layer_norm(residual + h2, vec[6:7, :], vec[7:8, :])
        # Dropout(p=0.2): identity in eval/inference mode.

    # torch: x.flatten(start_dim=1) -> (N, L*H), then the folded final linear.
    xn = x.reshape(N, L * H)
    out_ref[...] = (jnp.dot(xn, w34_ref[...],
                            preferred_element_type=jnp.float32) + b34)


def net_forward(x, params, *, seq_len, hidden, layers):
    """x: (N, 1, seq_len) float32, matching the PyTorch NCL conv input."""
    N, L, H = x.shape[0], seq_len, hidden
    xpad = jnp.pad(x[:, 0, :], ((0, 0), (1, 1)))                 # (N, L+2)
    # xwin[n*L + l, t] = xpad[n, l + t]  (conv taps in the lane dim)
    xwin = jnp.stack([xpad[:, 0:L], xpad[:, 1:L + 1], xpad[:, 2:L + 2]],
                     axis=-1).reshape(N * L, 3)
    xwin_p = jnp.pad(xwin, ((0, 0), (0, H - 3)))                 # (N*L, H)
    b34_p = jnp.pad(params['b34'], ((0, 0), (0, H - 2)))         # (1, H)

    # One small packed f32 input -> a single prologue DMA for the small stuff.
    pack = jnp.concatenate(
        [xwin_p,                                    # rows [0, N*L)
         params['vecs'].reshape(layers * 8, H),     # rows [N*L, N*L+8*layers)
         params['convp'],                           # 4 rows
         b34_p],                                    # 1 row
        axis=0).astype(jnp.float32)

    kernel = functools.partial(net_kernel, num_layers=layers,
                               seq_len=L, batch=N, hidden=H)

    vmem = pltpu.MemorySpace.VMEM
    return pl.pallas_call(
        kernel,
        out_shape=jax.ShapeDtypeStruct((N, 2), jnp.float32),
        in_specs=[pl.BlockSpec(memory_space=vmem),    # pack (small)
                  pl.BlockSpec(memory_space=vmem),    # w34 folded final linear
                  pl.BlockSpec(memory_space=pl.ANY)], # wpack stays in HBM
        out_specs=pl.BlockSpec(memory_space=vmem),
        scratch_shapes=[pltpu.VMEM((2, H, 6 * H), jnp.bfloat16),  # double buf
                        pltpu.SemaphoreType.DMA((2,))],
    )(pack, params['w34'], params['wpack'])


def net_forward_ref(x, params, *, seq_len, hidden, layers):
    """Plain-JAX reference in the original torch layout (N, S, H)."""
    N, L, H = x.shape[0], seq_len, hidden
    xpad = jnp.pad(x[:, 0, :], ((0, 0), (1, 1)))
    cp = params['convp']
    xx = (xpad[:, 0:L, None] * cp[0] + xpad[:, 1:L + 1, None] * cp[1]
          + xpad[:, 2:L + 2, None] * cp[2] + cp[3])              # (N, S, H)

    def ln(t, g, b):
        mu = t.mean(-1, keepdims=True)
        var = ((t - mu) ** 2).mean(-1, keepdims=True)
        return (t - mu) / jnp.sqrt(var + 1e-5) * g + b

    for l in range(layers):
        wl = params['wpack'][l].astype(jnp.float32)
        inw, ow = wl[:, 0:3 * H], wl[:, 3 * H:4 * H]
        w1, w2 = wl[:, 4 * H:5 * H], wl[:, 5 * H:6 * H]
        vec = params['vecs'][l]
        qkv = xx @ inw + vec[0:3].reshape(3 * H)
        q, k, v = qkv[..., :H], qkv[..., H:2 * H], qkv[..., 2 * H:]
        # torch MHA (batch_first=False) sees (N, S, H) as (L=N, B=S, E=H).
        # 1/sqrt(H) is pre-folded into the q projection -> no extra scale here.
        scores = jnp.einsum('nse,mse->snm', q, k)
        p = jax.nn.softmax(scores, axis=-1)
        attn = jnp.einsum('snm,mse->nse', p, v)
        attn = attn @ ow + vec[3]
        xx = ln(xx + attn, vec[6], vec[7])
        h = jnp.maximum(xx @ w1 + vec[4], 0.0)
        h = h @ w2 + vec[5]
        xx = ln(xx + h, vec[6], vec[7])
    flat = xx.reshape(N, L * H)
    return flat @ params['w34'] + params['b34']


def init_params(key, seq_len, hidden, layers):
    """Parameters, pre-packed / pre-folded on the host (fewer bytes + DMAs)."""
    H = hidden
    ks = jax.random.split(key, 14)

    def nrm(k, shape, s=0.05):
        return (s * jax.random.normal(k, shape)).astype(jnp.float32)

    convw = nrm(ks[0], (3, H))             # Conv1d weight (H,1,3) -> (3,H)
    convb = nrm(ks[1], (1, H))
    inw = nrm(ks[2], (layers, H, 3 * H))   # in_proj_weight^T per layer
    inb = nrm(ks[3], (layers, 3, H))       # in_proj_bias as q/k/v rows
    ow = nrm(ks[4], (layers, H, H))        # out_proj weight^T
    ob = nrm(ks[5], (layers, 1, H))
    w1 = nrm(ks[6], (layers, H, H))
    b1 = nrm(ks[7], (layers, 1, H))
    w2 = nrm(ks[8], (layers, H, H))
    b2 = nrm(ks[9], (layers, 1, H))
    lng = jnp.ones((layers, 1, H), jnp.float32)   # LayerNorm default init
    lnb = jnp.zeros((layers, 1, H), jnp.float32)
    w3 = nrm(ks[10], (seq_len * H, 640))   # linear_layer3 weight^T
    b3 = nrm(ks[11], (1, 640))
    w4 = nrm(ks[12], (640, 2))             # linear_layer4 weight^T
    b4 = nrm(ks[13], (1, 2))

    # Fold the 1/sqrt(H) attention scale into the q projection (exact:
    # softmax((q k)/sqrt(H)) == softmax(((q/sqrt(H)) k))).
    scale = 1.0 / math.sqrt(H)
    inw = inw.at[:, :, 0:H].multiply(scale)
    inb = inb.at[:, 0, :].multiply(scale)

    # Fold linear_layer3 @ linear_layer4 (no nonlinearity in between -> exact).
    w34 = w3 @ w4                          # (seq_len*H, 2)
    b34 = b3 @ w4 + b4                     # (1, 2)

    return dict(
        convp=jnp.concatenate([convw, convb], axis=0),              # (4, H)
        vecs=jnp.concatenate([inb, ob, b1, b2, lng, lnb], axis=1),  # (layers, 8, H)
        wpack=jnp.concatenate([inw, ow, w1, w2],
                              axis=-1).astype(jnp.bfloat16),        # (layers, H, 6H)
        w34=w34,
        b34=b34,
    )


if __name__ == "__main__":
    seq_len, hidden, layers, batch = 8, 128, 3, 2
    key = jax.random.PRNGKey(0)
    kx, kp = jax.random.split(key)
    x = jax.random.normal(kx, (batch, 1, seq_len), dtype=jnp.float32)
    params = init_params(kp, seq_len, hidden, layers)

    out = net_forward(x, params, seq_len=seq_len, hidden=hidden, layers=layers)
    out = jax.block_until_ready(out)

    ref = net_forward_ref(x, params, seq_len=seq_len, hidden=hidden,
                          layers=layers)
    assert out.shape == (batch, 2)
    assert bool(jnp.all(jnp.isfinite(out)))
    assert bool(jnp.allclose(out, ref, rtol=2e-2, atol=2e-2)), (out, ref)
    print("KERNEL_OK")
</pallas_src>

<mosaic_0001>
module attributes {stable_mosaic.version = 11 : i64} {
  func.func @net_kernel(%arg0: memref<45x128xf32, #tpu.memory_space<vmem>>, %arg1: memref<1024x2xf32, #tpu.memory_space<vmem>>, %arg2: memref<3x128x768xbf16, #tpu.memory_space<any>>, %arg3: memref<2x2xf32, #tpu.memory_space<vmem>>, %arg4: memref<2x128x768xbf16, #tpu.memory_space<vmem>>, %arg5: memref<2x!tpu.dma_semaphore, #tpu.memory_space<semaphore_mem>>) attributes {dimension_semantics = [], scalar_prefetch = 0 : i64, scratch_operands = 2 : i64, tpu.core_type = #tpu.core_type<tc>} {
    %c0_i32 = arith.constant 0 : i32
    %c0_i32_0 = arith.constant 0 : i32
    %c0_i32_1 = arith.constant 0 : i32
    %c0_i32_2 = arith.constant 0 : i32
    %c0_i32_3 = arith.constant 0 : i32
    %0 = tpu.memref_slice %arg2[%c0_i32, %c0_i32_2, %c0_i32_3] : memref<3x128x768xbf16, #tpu.memory_space<any>> -> memref<1x128x768xbf16, #tpu.memory_space<any>>
    %1 = tpu.memref_squeeze %0 : memref<1x128x768xbf16, #tpu.memory_space<any>> -> memref<128x768xbf16, #tpu.memory_space<any>>
    %c0_i32_4 = arith.constant 0 : i32
    %c0_i32_5 = arith.constant 0 : i32
    %2 = tpu.memref_slice %arg4[%c0_i32_0, %c0_i32_4, %c0_i32_5] : memref<2x128x768xbf16, #tpu.memory_space<vmem>> -> memref<1x128x768xbf16, #tpu.memory_space<vmem>>
    %3 = tpu.memref_squeeze %2 : memref<1x128x768xbf16, #tpu.memory_space<vmem>> -> memref<128x768xbf16, #tpu.memory_space<vmem>>
    %4 = tpu.memref_slice %arg5[%c0_i32_1] : memref<2x!tpu.dma_semaphore, #tpu.memory_space<semaphore_mem>> -> memref<1x!tpu.dma_semaphore, #tpu.memory_space<semaphore_mem>>
    %5 = tpu.memref_squeeze %4 : memref<1x!tpu.dma_semaphore, #tpu.memory_space<semaphore_mem>> -> memref<!tpu.dma_semaphore, #tpu.memory_space<semaphore_mem>>
    tpu.enqueue_dma source(%1 : memref<128x768xbf16, #tpu.memory_space<any>>) target(%3 : memref<128x768xbf16, #tpu.memory_space<vmem>>) target_semaphore(%5 : memref<!tpu.dma_semaphore, #tpu.memory_space<semaphore_mem>>)
    %c0 = arith.constant 0 : index
    %c0_6 = arith.constant 0 : index
    %6 = vector.load %arg0[%c0, %c0_6] : memref<45x128xf32, #tpu.memory_space<vmem>>, vector<16x128xf32>
    %c40 = arith.constant 40 : index
    %c0_7 = arith.constant 0 : index
    %7 = vector.load %arg0[%c40, %c0_7] : memref<45x128xf32, #tpu.memory_space<vmem>>, vector<4x128xf32>
    %c44 = arith.constant 44 : index
    %c0_8 = arith.constant 0 : index
    %8 = vector.load %arg0[%c44, %c0_8] : memref<45x128xf32, #tpu.memory_space<vmem>>, vector<1x2xf32>
    %9 = vector.extract_strided_slice %6 {offsets = [0, 0], sizes = [16, 1], strides = [1, 1]} : vector<16x128xf32> to vector<16x1xf32>
    %10 = vector.extract_strided_slice %7 {offsets = [0, 0], sizes = [1, 128], strides = [1, 1]} : vector<4x128xf32> to vector<1x128xf32>
    %11 = vector.broadcast %9 : vector<16x1xf32> to vector<16x128xf32>
    %12 = vector.broadcast %10 : vector<1x128xf32> to vector<16x128xf32>
    %13 = arith.mulf %11, %12 : vector<16x128xf32>
    %14 = vector.extract_strided_slice %6 {offsets = [0, 1], sizes = [16, 1], strides = [1, 1]} : vector<16x128xf32> to vector<16x1xf32>
    %15 = vector.extract_strided_slice %7 {offsets = [1, 0], sizes = [1, 128], strides = [1, 1]} : vector<4x128xf32> to vector<1x128xf32>
    %16 = vector.broadcast %14 : vector<16x1xf32> to vector<16x128xf32>
    %17 = vector.broadcast %15 : vector<1x128xf32> to vector<16x128xf32>
    %18 = arith.mulf %16, %17 : vector<16x128xf32>
    %19 = arith.addf %13, %18 : vector<16x128xf32>
    %20 = vector.extract_strided_slice %6 {offsets = [0, 2], sizes = [16, 1], strides = [1, 1]} : vector<16x128xf32> to vector<16x1xf32>
    %21 = vector.extract_strided_slice %7 {offsets = [2, 0], sizes = [1, 128], strides = [1, 1]} : vector<4x128xf32> to vector<1x128xf32>
    %22 = vector.broadcast %20 : vector<16x1xf32> to vector<16x128xf32>
    %23 = vector.broadcast %21 : vector<1x128xf32> to vector<16x128xf32>
    %24 = arith.mulf %22, %23 : vector<16x128xf32>
    %25 = arith.addf %19, %24 : vector<16x128xf32>
    %26 = vector.extract_strided_slice %7 {offsets = [3, 0], sizes = [1, 128], strides = [1, 1]} : vector<4x128xf32> to vector<1x128xf32>
    %27 = vector.broadcast %26 : vector<1x128xf32> to vector<16x128xf32>
    %28 = arith.addf %25, %27 : vector<16x128xf32>
    %c1_i32 = arith.constant 1 : i32
    %c1_i32_9 = arith.constant 1 : i32
    %c1_i32_10 = arith.constant 1 : i32
    %c0_i32_11 = arith.constant 0 : i32
    %c0_i32_12 = arith.constant 0 : i32
    %29 = tpu.memref_slice %arg2[%c1_i32, %c0_i32_11, %c0_i32_12] : memref<3x128x768xbf16, #tpu.memory_space<any>> -> memref<1x128x768xbf16, #tpu.memory_space<any>>
    %30 = tpu.memref_squeeze %29 : memref<1x128x768xbf16, #tpu.memory_space<any>> -> memref<128x768xbf16, #tpu.memory_space<any>>
    %c0_i32_13 = arith.constant 0 : i32
    %c0_i32_14 = arith.constant 0 : i32
    %31 = tpu.memref_slice %arg4[%c1_i32_9, %c0_i32_13, %c0_i32_14] : memref<2x128x768xbf16, #tpu.memory_space<vmem>> -> memref<1x128x768xbf16, #tpu.memory_space<vmem>>
    %32 = tpu.memref_squeeze %31 : memref<1x128x768xbf16, #tpu.memory_space<vmem>> -> memref<128x768xbf16, #tpu.memory_space<vmem>>
    %33 = tpu.memref_slice %arg5[%c1_i32_10] : memref<2x!tpu.dma_semaphore, #tpu.memory_space<semaphore_mem>> -> memref<1x!tpu.dma_semaphore, #tpu.memory_space<semaphore_mem>>
    %34 = tpu.memref_squeeze %33 : memref<1x!tpu.dma_semaphore, #tpu.memory_space<semaphore_mem>> -> memref<!tpu.dma_semaphore, #tpu.memory_space<semaphore_mem>>
    tpu.enqueue_dma source(%30 : memref<128x768xbf16, #tpu.memory_space<any>>) target(%32 : memref<128x768xbf16, #tpu.memory_space<vmem>>) target_semaphore(%34 : memref<!tpu.dma_semaphore, #tpu.memory_space<semaphore_mem>>)
    %c0_i32_15 = arith.constant 0 : i32
    %c0_i32_16 = arith.constant 0 : i32
    %c0_i32_17 = arith.constant 0 : i32
    %c0_i32_18 = arith.constant 0 : i32
    %c0_i32_19 = arith.constant 0 : i32
    %35 = tpu.memref_slice %arg2[%c0_i32_15, %c0_i32_18, %c0_i32_19] : memref<3x128x768xbf16, #tpu.memory_space<any>> -> memref<1x128x768xbf16, #tpu.memory_space<any>>
    %36 = tpu.memref_squeeze %35 : memref<1x128x768xbf16, #tpu.memory_space<any>> -> memref<128x768xbf16, #tpu.memory_space<any>>
    %c0_i32_20 = arith.constant 0 : i32
    %c0_i32_21 = arith.constant 0 : i32
    %37 = tpu.memref_slice %arg4[%c0_i32_16, %c0_i32_20, %c0_i32_21] : memref<2x128x768xbf16, #tpu.memory_space<vmem>> -> memref<1x128x768xbf16, #tpu.memory_space<vmem>>
    %38 = tpu.memref_squeeze %37 : memref<1x128x768xbf16, #tpu.memory_space<vmem>> -> memref<128x768xbf16, #tpu.memory_space<vmem>>
    %39 = tpu.memref_slice %arg5[%c0_i32_17] : memref<2x!tpu.dma_semaphore, #tpu.memory_space<semaphore_mem>> -> memref<1x!tpu.dma_semaphore, #tpu.memory_space<semaphore_mem>>
    %40 = tpu.memref_squeeze %39 : memref<1x!tpu.dma_semaphore, #tpu.memory_space<semaphore_mem>> -> memref<!tpu.dma_semaphore, #tpu.memory_space<semaphore_mem>>
    tpu.wait_dma2 semaphore(%40 : memref<!tpu.dma_semaphore, #tpu.memory_space<semaphore_mem>>) src(%36 : memref<128x768xbf16, #tpu.memory_space<any>>) dst(%38 : memref<128x768xbf16, #tpu.memory_space<vmem>>)
    %c16 = arith.constant 16 : index
    %c0_22 = arith.constant 0 : index
    %41 = vector.load %arg0[%c16, %c0_22] : memref<45x128xf32, #tpu.memory_space<vmem>>, vector<8x128xf32>
    %c0_23 = arith.constant 0 : index
    %c0_24 = arith.constant 0 : index
    %c0_25 = arith.constant 0 : index
    %42 = vector.load %arg4[%c0_23, %c0_24, %c0_25] : memref<2x128x768xbf16, #tpu.memory_space<vmem>>, vector<1x128x384xbf16>
    %43 = vector.shape_cast %42 : vector<1x128x384xbf16> to vector<128x384xbf16>
    %44 = arith.extf %43 : vector<128x384xbf16> to vector<128x384xf32>
    %c0_26 = arith.constant 0 : index
    %c0_27 = arith.constant 0 : index
    %c384 = arith.constant 384 : index
    %45 = vector.load %arg4[%c0_26, %c0_27, %c384] : memref<2x128x768xbf16, #tpu.memory_space<vmem>>, vector<1x128x128xbf16>
    %46 = vector.shape_cast %45 : vector<1x128x128xbf16> to vector<128x128xbf16>
    %47 = arith.extf %46 : vector<128x128xbf16> to vector<128x128xf32>
    %c0_28 = arith.constant 0 : index
    %c0_29 = arith.constant 0 : index
    %c512 = arith.constant 512 : index
    %48 = vector.load %arg4[%c0_28, %c0_29, %c512] : memref<2x128x768xbf16, #tpu.memory_space<vmem>>, vector<1x128x128xbf16>
    %49 = vector.shape_cast %48 : vector<1x128x128xbf16> to vector<128x128xbf16>
    %50 = arith.extf %49 : vector<128x128xbf16> to vector<128x128xf32>
    %c0_30 = arith.constant 0 : index
    %c0_31 = arith.constant 0 : index
    %c640 = arith.constant 640 : index
    %51 = vector.load %arg4[%c0_30, %c0_31, %c640] : memref<2x128x768xbf16, #tpu.memory_space<vmem>>, vector<1x128x128xbf16>
    %52 = vector.shape_cast %51 : vector<1x128x128xbf16> to vector<128x128xbf16>
    %53 = arith.extf %52 : vector<128x128xbf16> to vector<128x128xf32>
    %cst = arith.constant dense<0.000000e+00> : vector<16x384xf32>
    %54 = tpu.matmul %28, %44, %cst {dimension_numbers = #tpu.dot_dimension_numbers<[1], [0], [0], [1], [0, 0, 1, 1], [], []>} : vector<16x128xf32>, vector<128x384xf32>, vector<16x384xf32> -> vector<16x384xf32>
    %55 = vector.extract_strided_slice %54 {offsets = [0, 0], sizes = [16, 128], strides = [1, 1]} : vector<16x384xf32> to vector<16x128xf32>
    %56 = vector.extract_strided_slice %41 {offsets = [0, 0], sizes = [1, 128], strides = [1, 1]} : vector<8x128xf32> to vector<1x128xf32>
    %57 = vector.broadcast %56 : vector<1x128xf32> to vector<16x128xf32>
    %58 = arith.addf %55, %57 : vector<16x128xf32>
    %59 = vector.extract_strided_slice %54 {offsets = [0, 128], sizes = [16, 128], strides = [1, 1]} : vector<16x384xf32> to vector<16x128xf32>
    %60 = vector.extract_strided_slice %41 {offsets = [1, 0], sizes = [1, 128], strides = [1, 1]} : vector<8x128xf32> to vector<1x128xf32>
    %61 = vector.broadcast %60 : vector<1x128xf32> to vector<16x128xf32>
    %62 = arith.addf %59, %61 : vector<16x128xf32>
    %63 = vector.extract_strided_slice %54 {offsets = [0, 256], sizes = [16, 128], strides = [1, 1]} : vector<16x384xf32> to vector<16x128xf32>
    %64 = vector.extract_strided_slice %41 {offsets = [2, 0], sizes = [1, 128], strides = [1, 1]} : vector<8x128xf32> to vector<1x128xf32>
    %65 = vector.broadcast %64 : vector<1x128xf32> to vector<16x128xf32>
    %66 = arith.addf %63, %65 : vector<16x128xf32>
    %67 = arith.mulf %58, %62 : vector<16x128xf32>
    %cst_32 = arith.constant dense<0.000000e+00> : vector<16xf32>
    %68 = vector.multi_reduction <add>, %67, %cst_32 [1] : vector<16x128xf32> to vector<16xf32>
    %69 = vector.shape_cast %68 : vector<16xf32> to vector<16x1xf32>
    %70 = vector.extract_strided_slice %62 {offsets = [8, 0], sizes = [8, 128], strides = [1, 1]} : vector<16x128xf32> to vector<8x128xf32>
    %71 = vector.extract_strided_slice %62 {offsets = [0, 0], sizes = [8, 128], strides = [1, 1]} : vector<16x128xf32> to vector<8x128xf32>
    %72 = tpu.concatenate %70, %71 in 0 : vector<8x128xf32>, vector<8x128xf32> -> vector<16x128xf32>
    %73 = arith.mulf %58, %72 : vector<16x128xf32>
    %cst_33 = arith.constant dense<0.000000e+00> : vector<16xf32>
    %74 = vector.multi_reduction <add>, %73, %cst_33 [1] : vector<16x128xf32> to vector<16xf32>
    %75 = vector.shape_cast %74 : vector<16xf32> to vector<16x1xf32>
    %76 = arith.maximumf %69, %75 : vector<16x1xf32>
    %77 = arith.subf %69, %76 : vector<16x1xf32>
    %78 = math.exp %77 : vector<16x1xf32>
    %79 = arith.subf %75, %76 : vector<16x1xf32>
    %80 = math.exp %79 : vector<16x1xf32>
    %81 = arith.addf %78, %80 : vector<16x1xf32>
    %82 = tpu.reciprocal %81 {approx = true} : vector<16x1xf32> -> vector<16x1xf32>
    %83 = arith.mulf %78, %82 : vector<16x1xf32>
    %84 = vector.broadcast %83 : vector<16x1xf32> to vector<16x128xf32>
    %85 = arith.mulf %84, %66 : vector<16x128xf32>
    %86 = arith.mulf %80, %82 : vector<16x1xf32>
    %87 = vector.extract_strided_slice %66 {offsets = [8, 0], sizes = [8, 128], strides = [1, 1]} : vector<16x128xf32> to vector<8x128xf32>
    %88 = vector.extract_strided_slice %66 {offsets = [0, 0], sizes = [8, 128], strides = [1, 1]} : vector<16x128xf32> to vector<8x128xf32>
    %89 = tpu.concatenate %87, %88 in 0 : vector<8x128xf32>, vector<8x128xf32> -> vector<16x128xf32>
    %90 = vector.broadcast %86 : vector<16x1xf32> to vector<16x128xf32>
    %91 = arith.mulf %90, %89 : vector<16x128xf32>
    %92 = arith.addf %85, %91 : vector<16x128xf32>
    %cst_34 = arith.constant dense<0.000000e+00> : vector<16x128xf32>
    %93 = tpu.matmul %92, %47, %cst_34 {dimension_numbers = #tpu.dot_dimension_numbers<[1], [0], [0], [1], [0, 0, 1, 1], [], []>} : vector<16x128xf32>, vector<128x128xf32>, vector<16x128xf32> -> vector<16x128xf32>
    %94 = vector.extract_strided_slice %41 {offsets = [3, 0], sizes = [1, 128], strides = [1, 1]} : vector<8x128xf32> to vector<1x128xf32>
    %95 = vector.broadcast %94 : vector<1x128xf32> to vector<16x128xf32>
    %96 = arith.addf %93, %95 : vector<16x128xf32>
    %97 = arith.addf %28, %96 : vector<16x128xf32>
    %98 = vector.extract_strided_slice %41 {offsets = [6, 0], sizes = [1, 128], strides = [1, 1]} : vector<8x128xf32> to vector<1x128xf32>
    %99 = vector.extract_strided_slice %41 {offsets = [7, 0], sizes = [1, 128], strides = [1, 1]} : vector<8x128xf32> to vector<1x128xf32>
    %cst_35 = arith.constant dense<0.000000e+00> : vector<16xf32>
    %100 = vector.multi_reduction <add>, %97, %cst_35 [1] : vector<16x128xf32> to vector<16xf32>
    %101 = vector.shape_cast %100 : vector<16xf32> to vector<16x1xf32>
    %cst_36 = arith.constant 1.280000e+02 : f32
    %102 = vector.broadcast %cst_36 : f32 to vector<16x1xf32>
    %103 = arith.divf %101, %102 : vector<16x1xf32>
    %104 = vector.broadcast %103 : vector<16x1xf32> to vector<16x128xf32>
    %105 = arith.subf %97, %104 : vector<16x128xf32>
    %106 = arith.mulf %105, %105 : vector<16x128xf32>
    %cst_37 = arith.constant dense<0.000000e+00> : vector<16xf32>
    %107 = vector.multi_reduction <add>, %106, %cst_37 [1] : vector<16x128xf32> to vector<16xf32>
    %108 = vector.shape_cast %107 : vector<16xf32> to vector<16x1xf32>
    %cst_38 = arith.constant 1.280000e+02 : f32
    %109 = vector.broadcast %cst_38 : f32 to vector<16x1xf32>
    %110 = arith.divf %108, %109 : vector<16x1xf32>
    %111 = vector.broadcast %103 : vector<16x1xf32> to vector<16x128xf32>
    %112 = arith.subf %97, %111 : vector<16x128xf32>
    %cst_39 = arith.constant 9.99999974E-6 : f32
    %113 = vector.broadcast %cst_39 : f32 to vector<16x1xf32>
    %114 = arith.addf %110, %113 : vector<16x1xf32>
    %115 = math.rsqrt %114 : vector<16x1xf32>
    %116 = vector.broadcast %115 : vector<16x1xf32> to vector<16x128xf32>
    %117 = arith.mulf %112, %116 : vector<16x128xf32>
    %118 = vector.broadcast %98 : vector<1x128xf32> to vector<16x128xf32>
    %119 = arith.mulf %117, %118 : vector<16x128xf32>
    %120 = vector.broadcast %99 : vector<1x128xf32> to vector<16x128xf32>
    %121 = arith.addf %119, %120 : vector<16x128xf32>
    %cst_40 = arith.constant dense<0.000000e+00> : vector<16x128xf32>
    %122 = tpu.matmul %121, %50, %cst_40 {dimension_numbers = #tpu.dot_dimension_numbers<[1], [0], [0], [1], [0, 0, 1, 1], [], []>} : vector<16x128xf32>, vector<128x128xf32>, vector<16x128xf32> -> vector<16x128xf32>
    %123 = vector.extract_strided_slice %41 {offsets = [4, 0], sizes = [1, 128], strides = [1, 1]} : vector<8x128xf32> to vector<1x128xf32>
    %124 = vector.broadcast %123 : vector<1x128xf32> to vector<16x128xf32>
    %125 = arith.addf %122, %124 : vector<16x128xf32>
    %cst_41 = arith.constant 0.000000e+00 : f32
    %126 = vector.broadcast %cst_41 : f32 to vector<16x128xf32>
    %127 = arith.maximumf %125, %126 : vector<16x128xf32>
    %cst_42 = arith.constant dense<0.000000e+00> : vector<16x128xf32>
    %128 = tpu.matmul %127, %53, %cst_42 {dimension_numbers = #tpu.dot_dimension_numbers<[1], [0], [0], [1], [0, 0, 1, 1], [], []>} : vector<16x128xf32>, vector<128x128xf32>, vector<16x128xf32> -> vector<16x128xf32>
    %129 = vector.extract_strided_slice %41 {offsets = [5, 0], sizes = [1, 128], strides = [1, 1]} : vector<8x128xf32> to vector<1x128xf32>
    %130 = vector.broadcast %129 : vector<1x128xf32> to vector<16x128xf32>
    %131 = arith.addf %128, %130 : vector<16x128xf32>
    %132 = arith.addf %121, %131 : vector<16x128xf32>
    %133 = vector.extract_strided_slice %41 {offsets = [6, 0], sizes = [1, 128], strides = [1, 1]} : vector<8x128xf32> to vector<1x128xf32>
    %134 = vector.extract_strided_slice %41 {offsets = [7, 0], sizes = [1, 128], strides = [1, 1]} : vector<8x128xf32> to vector<1x128xf32>
    %cst_43 = arith.constant dense<0.000000e+00> : vector<16xf32>
    %135 = vector.multi_reduction <add>, %132, %cst_43 [1] : vector<16x128xf32> to vector<16xf32>
    %136 = vector.shape_cast %135 : vector<16xf32> to vector<16x1xf32>
    %cst_44 = arith.constant 1.280000e+02 : f32
    %137 = vector.broadcast %cst_44 : f32 to vector<16x1xf32>
    %138 = arith.divf %136, %137 : vector<16x1xf32>
    %139 = vector.broadcast %138 : vector<16x1xf32> to vector<16x128xf32>
    %140 = arith.subf %132, %139 : vector<16x128xf32>
    %141 = arith.mulf %140, %140 : vector<16x128xf32>
    %cst_45 = arith.constant dense<0.000000e+00> : vector<16xf32>
    %142 = vector.multi_reduction <add>, %141, %cst_45 [1] : vector<16x128xf32> to vector<16xf32>
    %143 = vector.shape_cast %142 : vector<16xf32> to vector<16x1xf32>
    %cst_46 = arith.constant 1.280000e+02 : f32
    %144 = vector.broadcast %cst_46 : f32 to vector<16x1xf32>
    %145 = arith.divf %143, %144 : vector<16x1xf32>
    %146 = vector.broadcast %138 : vector<16x1xf32> to vector<16x128xf32>
    %147 = arith.subf %132, %146 : vector<16x128xf32>
    %cst_47 = arith.constant 9.99999974E-6 : f32
    %148 = vector.broadcast %cst_47 : f32 to vector<16x1xf32>
    %149 = arith.addf %145, %148 : vector<16x1xf32>
    %150 = math.rsqrt %149 : vector<16x1xf32>
    %151 = vector.broadcast %150 : vector<16x1xf32> to vector<16x128xf32>
    %152 = arith.mulf %147, %151 : vector<16x128xf32>
    %153 = vector.broadcast %133 : vector<1x128xf32> to vector<16x128xf32>
    %154 = arith.mulf %152, %153 : vector<16x128xf32>
    %155 = vector.broadcast %134 : vector<1x128xf32> to vector<16x128xf32>
    %156 = arith.addf %154, %155 : vector<16x128xf32>
    %c2_i32 = arith.constant 2 : i32
    %c0_i32_48 = arith.constant 0 : i32
    %c0_i32_49 = arith.constant 0 : i32
    %c0_i32_50 = arith.constant 0 : i32
    %c0_i32_51 = arith.constant 0 : i32
    %157 = tpu.memref_slice %arg2[%c2_i32, %c0_i32_50, %c0_i32_51] : memref<3x128x768xbf16, #tpu.memory_space<any>> -> memref<1x128x768xbf16, #tpu.memory_space<any>>
    %158 = tpu.memref_squeeze %157 : memref<1x128x768xbf16, #tpu.memory_space<any>> -> memref<128x768xbf16, #tpu.memory_space<any>>
    %c0_i32_52 = arith.constant 0 : i32
    %c0_i32_53 = arith.constant 0 : i32
    %159 = tpu.memref_slice %arg4[%c0_i32_48, %c0_i32_52, %c0_i32_53] : memref<2x128x768xbf16, #tpu.memory_space<vmem>> -> memref<1x128x768xbf16, #tpu.memory_space<vmem>>
    %160 = tpu.memref_squeeze %159 : memref<1x128x768xbf16, #tpu.memory_space<vmem>> -> memref<128x768xbf16, #tpu.memory_space<vmem>>
    %161 = tpu.memref_slice %arg5[%c0_i32_49] : memref<2x!tpu.dma_semaphore, #tpu.memory_space<semaphore_mem>> -> memref<1x!tpu.dma_semaphore, #tpu.memory_space<semaphore_mem>>
    %162 = tpu.memref_squeeze %161 : memref<1x!tpu.dma_semaphore, #tpu.memory_space<semaphore_mem>> -> memref<!tpu.dma_semaphore, #tpu.memory_space<semaphore_mem>>
    tpu.enqueue_dma source(%158 : memref<128x768xbf16, #tpu.memory_space<any>>) target(%160 : memref<128x768xbf16, #tpu.memory_space<vmem>>) target_semaphore(%162 : memref<!tpu.dma_semaphore, #tpu.memory_space<semaphore_mem>>)
    %c1_i32_54 = arith.constant 1 : i32
    %c1_i32_55 = arith.constant 1 : i32
    %c1_i32_56 = arith.constant 1 : i32
    %c0_i32_57 = arith.constant 0 : i32
    %c0_i32_58 = arith.constant 0 : i32
    %163 = tpu.memref_slice %arg2[%c1_i32_54, %c0_i32_57, %c0_i32_58] : memref<3x128x768xbf16, #tpu.memory_space<any>> -> memref<1x128x768xbf16, #tpu.memory_space<any>>
    %164 = tpu.memref_squeeze %163 : memref<1x128x768xbf16, #tpu.memory_space<any>> -> memref<128x768xbf16, #tpu.memory_space<any>>
    %c0_i32_59 = arith.constant 0 : i32
    %c0_i32_60 = arith.constant 0 : i32
    %165 = tpu.memref_slice %arg4[%c1_i32_55, %c0_i32_59, %c0_i32_60] : memref<2x128x768xbf16, #tpu.memory_space<vmem>> -> memref<1x128x768xbf16, #tpu.memory_space<vmem>>
    %166 = tpu.memref_squeeze %165 : memref<1x128x768xbf16, #tpu.memory_space<vmem>> -> memref<128x768xbf16, #tpu.memory_space<vmem>>
    %167 = tpu.memref_slice %arg5[%c1_i32_56] : memref<2x!tpu.dma_semaphore, #tpu.memory_space<semaphore_mem>> -> memref<1x!tpu.dma_semaphore, #tpu.memory_space<semaphore_mem>>
    %168 = tpu.memref_squeeze %167 : memref<1x!tpu.dma_semaphore, #tpu.memory_space<semaphore_mem>> -> memref<!tpu.dma_semaphore, #tpu.memory_space<semaphore_mem>>
    tpu.wait_dma2 semaphore(%168 : memref<!tpu.dma_semaphore, #tpu.memory_space<semaphore_mem>>) src(%164 : memref<128x768xbf16, #tpu.memory_space<any>>) dst(%166 : memref<128x768xbf16, #tpu.memory_space<vmem>>)
    %c24 = arith.constant 24 : index
    %c0_61 = arith.constant 0 : index
    %169 = vector.load %arg0[%c24, %c0_61] : memref<45x128xf32, #tpu.memory_space<vmem>>, vector<8x128xf32>
    %c1 = arith.constant 1 : index
    %c0_62 = arith.constant 0 : index
    %c0_63 = arith.constant 0 : index
    %170 = vector.load %arg4[%c1, %c0_62, %c0_63] : memref<2x128x768xbf16, #tpu.memory_space<vmem>>, vector<1x128x384xbf16>
    %171 = vector.shape_cast %170 : vector<1x128x384xbf16> to vector<128x384xbf16>
    %172 = arith.extf %171 : vector<128x384xbf16> to vector<128x384xf32>
    %c1_64 = arith.constant 1 : index
    %c0_65 = arith.constant 0 : index
    %c384_66 = arith.constant 384 : index
    %173 = vector.load %arg4[%c1_64, %c0_65, %c384_66] : memref<2x128x768xbf16, #tpu.memory_space<vmem>>, vector<1x128x128xbf16>
    %174 = vector.shape_cast %173 : vector<1x128x128xbf16> to vector<128x128xbf16>
    %175 = arith.extf %174 : vector<128x128xbf16> to vector<128x128xf32>
    %c1_67 = arith.constant 1 : index
    %c0_68 = arith.constant 0 : index
    %c512_69 = arith.constant 512 : index
    %176 = vector.load %arg4[%c1_67, %c0_68, %c512_69] : memref<2x128x768xbf16, #tpu.memory_space<vmem>>, vector<1x128x128xbf16>
    %177 = vector.shape_cast %176 : vector<1x128x128xbf16> to vector<128x128xbf16>
    %178 = arith.extf %177 : vector<128x128xbf16> to vector<128x128xf32>
    %c1_70 = arith.constant 1 : index
    %c0_71 = arith.constant 0 : index
    %c640_72 = arith.constant 640 : index
    %179 = vector.load %arg4[%c1_70, %c0_71, %c640_72] : memref<2x128x768xbf16, #tpu.memory_space<vmem>>, vector<1x128x128xbf16>
    %180 = vector.shape_cast %179 : vector<1x128x128xbf16> to vector<128x128xbf16>
    %181 = arith.extf %180 : vector<128x128xbf16> to vector<128x128xf32>
    %cst_73 = arith.constant dense<0.000000e+00> : vector<16x384xf32>
    %182 = tpu.matmul %156, %172, %cst_73 {dimension_numbers = #tpu.dot_dimension_numbers<[1], [0], [0], [1], [0, 0, 1, 1], [], []>} : vector<16x128xf32>, vector<128x384xf32>, vector<16x384xf32> -> vector<16x384xf32>
    %183 = vector.extract_strided_slice %182 {offsets = [0, 0], sizes = [16, 128], strides = [1, 1]} : vector<16x384xf32> to vector<16x128xf32>
    %184 = vector.extract_strided_slice %169 {offsets = [0, 0], sizes = [1, 128], strides = [1, 1]} : vector<8x128xf32> to vector<1x128xf32>
    %185 = vector.broadcast %184 : vector<1x128xf32> to vector<16x128xf32>
    %186 = arith.addf %183, %185 : vector<16x128xf32>
    %187 = vector.extract_strided_slice %182 {offsets = [0, 128], sizes = [16, 128], strides = [1, 1]} : vector<16x384xf32> to vector<16x128xf32>
    %188 = vector.extract_strided_slice %169 {offsets = [1, 0], sizes = [1, 128], strides = [1, 1]} : vector<8x128xf32> to vector<1x128xf32>
    %189 = vector.broadcast %188 : vector<1x128xf32> to vector<16x128xf32>
    %190 = arith.addf %187, %189 : vector<16x128xf32>
    %191 = vector.extract_strided_slice %182 {offsets = [0, 256], sizes = [16, 128], strides = [1, 1]} : vector<16x384xf32> to vector<16x128xf32>
    %192 = vector.extract_strided_slice %169 {offsets = [2, 0], sizes = [1, 128], strides = [1, 1]} : vector<8x128xf32> to vector<1x128xf32>
    %193 = vector.broadcast %192 : vector<1x128xf32> to vector<16x128xf32>
    %194 = arith.addf %191, %193 : vector<16x128xf32>
    %195 = arith.mulf %186, %190 : vector<16x128xf32>
    %cst_74 = arith.constant dense<0.000000e+00> : vector<16xf32>
    %196 = vector.multi_reduction <add>, %195, %cst_74 [1] : vector<16x128xf32> to vector<16xf32>
    %197 = vector.shape_cast %196 : vector<16xf32> to vector<16x1xf32>
    %198 = vector.extract_strided_slice %190 {offsets = [8, 0], sizes = [8, 128], strides = [1, 1]} : vector<16x128xf32> to vector<8x128xf32>
    %199 = vector.extract_strided_slice %190 {offsets = [0, 0], sizes = [8, 128], strides = [1, 1]} : vector<16x128xf32> to vector<8x128xf32>
    %200 = tpu.concatenate %198, %199 in 0 : vector<8x128xf32>, vector<8x128xf32> -> vector<16x128xf32>
    %201 = arith.mulf %186, %200 : vector<16x128xf32>
    %cst_75 = arith.constant dense<0.000000e+00> : vector<16xf32>
    %202 = vector.multi_reduction <add>, %201, %cst_75 [1] : vector<16x128xf32> to vector<16xf32>
    %203 = vector.shape_cast %202 : vector<16xf32> to vector<16x1xf32>
    %204 = arith.maximumf %197, %203 : vector<16x1xf32>
    %205 = arith.subf %197, %204 : vector<16x1xf32>
    %206 = math.exp %205 : vector<16x1xf32>
    %207 = arith.subf %203, %204 : vector<16x1xf32>
    %208 = math.exp %207 : vector<16x1xf32>
    %209 = arith.addf %206, %208 : vector<16x1xf32>
    %210 = tpu.reciprocal %209 {approx = true} : vector<16x1xf32> -> vector<16x1xf32>
    %211 = arith.mulf %206, %210 : vector<16x1xf32>
    %212 = vector.broadcast %211 : vector<16x1xf32> to vector<16x128xf32>
    %213 = arith.mulf %212, %194 : vector<16x128xf32>
    %214 = arith.mulf %208, %210 : vector<16x1xf32>
    %215 = vector.extract_strided_slice %194 {offsets = [8, 0], sizes = [8, 128], strides = [1, 1]} : vector<16x128xf32> to vector<8x128xf32>
    %216 = vector.extract_strided_slice %194 {offsets = [0, 0], sizes = [8, 128], strides = [1, 1]} : vector<16x128xf32> to vector<8x128xf32>
    %217 = tpu.concatenate %215, %216 in 0 : vector<8x128xf32>, vector<8x128xf32> -> vector<16x128xf32>
    %218 = vector.broadcast %214 : vector<16x1xf32> to vector<16x128xf32>
    %219 = arith.mulf %218, %217 : vector<16x128xf32>
    %220 = arith.addf %213, %219 : vector<16x128xf32>
    %cst_76 = arith.constant dense<0.000000e+00> : vector<16x128xf32>
    %221 = tpu.matmul %220, %175, %cst_76 {dimension_numbers = #tpu.dot_dimension_numbers<[1], [0], [0], [1], [0, 0, 1, 1], [], []>} : vector<16x128xf32>, vector<128x128xf32>, vector<16x128xf32> -> vector<16x128xf32>
    %222 = vector.extract_strided_slice %169 {offsets = [3, 0], sizes = [1, 128], strides = [1, 1]} : vector<8x128xf32> to vector<1x128xf32>
    %223 = vector.broadcast %222 : vector<1x128xf32> to vector<16x128xf32>
    %224 = arith.addf %221, %223 : vector<16x128xf32>
    %225 = arith.addf %156, %224 : vector<16x128xf32>
    %226 = vector.extract_strided_slice %169 {offsets = [6, 0], sizes = [1, 128], strides = [1, 1]} : vector<8x128xf32> to vector<1x128xf32>
    %227 = vector.extract_strided_slice %169 {offsets = [7, 0], sizes = [1, 128], strides = [1, 1]} : vector<8x128xf32> to vector<1x128xf32>
    %cst_77 = arith.constant dense<0.000000e+00> : vector<16xf32>
    %228 = vector.multi_reduction <add>, %225, %cst_77 [1] : vector<16x128xf32> to vector<16xf32>
    %229 = vector.shape_cast %228 : vector<16xf32> to vector<16x1xf32>
    %cst_78 = arith.constant 1.280000e+02 : f32
    %230 = vector.broadcast %cst_78 : f32 to vector<16x1xf32>
    %231 = arith.divf %229, %230 : vector<16x1xf32>
    %232 = vector.broadcast %231 : vector<16x1xf32> to vector<16x128xf32>
    %233 = arith.subf %225, %232 : vector<16x128xf32>
    %234 = arith.mulf %233, %233 : vector<16x128xf32>
    %cst_79 = arith.constant dense<0.000000e+00> : vector<16xf32>
    %235 = vector.multi_reduction <add>, %234, %cst_79 [1] : vector<16x128xf32> to vector<16xf32>
    %236 = vector.shape_cast %235 : vector<16xf32> to vector<16x1xf32>
    %cst_80 = arith.constant 1.280000e+02 : f32
    %237 = vector.broadcast %cst_80 : f32 to vector<16x1xf32>
    %238 = arith.divf %236, %237 : vector<16x1xf32>
    %239 = vector.broadcast %231 : vector<16x1xf32> to vector<16x128xf32>
    %240 = arith.subf %225, %239 : vector<16x128xf32>
    %cst_81 = arith.constant 9.99999974E-6 : f32
    %241 = vector.broadcast %cst_81 : f32 to vector<16x1xf32>
    %242 = arith.addf %238, %241 : vector<16x1xf32>
    %243 = math.rsqrt %242 : vector<16x1xf32>
    %244 = vector.broadcast %243 : vector<16x1xf32> to vector<16x128xf32>
    %245 = arith.mulf %240, %244 : vector<16x128xf32>
    %246 = vector.broadcast %226 : vector<1x128xf32> to vector<16x128xf32>
    %247 = arith.mulf %245, %246 : vector<16x128xf32>
    %248 = vector.broadcast %227 : vector<1x128xf32> to vector<16x128xf32>
    %249 = arith.addf %247, %248 : vector<16x128xf32>
    %cst_82 = arith.constant dense<0.000000e+00> : vector<16x128xf32>
    %250 = tpu.matmul %249, %178, %cst_82 {dimension_numbers = #tpu.dot_dimension_numbers<[1], [0], [0], [1], [0, 0, 1, 1], [], []>} : vector<16x128xf32>, vector<128x128xf32>, vector<16x128xf32> -> vector<16x128xf32>
    %251 = vector.extract_strided_slice %169 {offsets = [4, 0], sizes = [1, 128], strides = [1, 1]} : vector<8x128xf32> to vector<1x128xf32>
    %252 = vector.broadcast %251 : vector<1x128xf32> to vector<16x128xf32>
    %253 = arith.addf %250, %252 : vector<16x128xf32>
    %cst_83 = arith.constant 0.000000e+00 : f32
    %254 = vector.broadcast %cst_83 : f32 to vector<16x128xf32>
    %255 = arith.maximumf %253, %254 : vector<16x128xf32>
    %cst_84 = arith.constant dense<0.000000e+00> : vector<16x128xf32>
    %256 = tpu.matmul %255, %181, %cst_84 {dimension_numbers = #tpu.dot_dimension_numbers<[1], [0], [0], [1], [0, 0, 1, 1], [], []>} : vector<16x128xf32>, vector<128x128xf32>, vector<16x128xf32> -> vector<16x128xf32>
    %257 = vector.extract_strided_slice %169 {offsets = [5, 0], sizes = [1, 128], strides = [1, 1]} : vector<8x128xf32> to vector<1x128xf32>
    %258 = vector.broadcast %257 : vector<1x128xf32> to vector<16x128xf32>
    %259 = arith.addf %256, %258 : vector<16x128xf32>
    %260 = arith.addf %249, %259 : vector<16x128xf32>
    %261 = vector.extract_strided_slice %169 {offsets = [6, 0], sizes = [1, 128], strides = [1, 1]} : vector<8x128xf32> to vector<1x128xf32>
    %262 = vector.extract_strided_slice %169 {offsets = [7, 0], sizes = [1, 128], strides = [1, 1]} : vector<8x128xf32> to vector<1x128xf32>
    %cst_85 = arith.constant dense<0.000000e+00> : vector<16xf32>
    %263 = vector.multi_reduction <add>, %260, %cst_85 [1] : vector<16x128xf32> to vector<16xf32>
    %264 = vector.shape_cast %263 : vector<16xf32> to vector<16x1xf32>
    %cst_86 = arith.constant 1.280000e+02 : f32
    %265 = vector.broadcast %cst_86 : f32 to vector<16x1xf32>
    %266 = arith.divf %264, %265 : vector<16x1xf32>
    %267 = vector.broadcast %266 : vector<16x1xf32> to vector<16x128xf32>
    %268 = arith.subf %260, %267 : vector<16x128xf32>
    %269 = arith.mulf %268, %268 : vector<16x128xf32>
    %cst_87 = arith.constant dense<0.000000e+00> : vector<16xf32>
    %270 = vector.multi_reduction <add>, %269, %cst_87 [1] : vector<16x128xf32> to vector<16xf32>
    %271 = vector.shape_cast %270 : vector<16xf32> to vector<16x1xf32>
    %cst_88 = arith.constant 1.280000e+02 : f32
    %272 = vector.broadcast %cst_88 : f32 to vector<16x1xf32>
    %273 = arith.divf %271, %272 : vector<16x1xf32>
    %274 = vector.broadcast %266 : vector<16x1xf32> to vector<16x128xf32>
    %275 = arith.subf %260, %274 : vector<16x128xf32>
    %cst_89 = arith.constant 9.99999974E-6 : f32
    %276 = vector.broadcast %cst_89 : f32 to vector<16x1xf32>
    %277 = arith.addf %273, %276 : vector<16x1xf32>
    %278 = math.rsqrt %277 : vector<16x1xf32>
    %279 = vector.broadcast %278 : vector<16x1xf32> to vector<16x128xf32>
    %280 = arith.mulf %275, %279 : vector<16x128xf32>
    %281 = vector.broadcast %261 : vector<1x128xf32> to vector<16x128xf32>
    %282 = arith.mulf %280, %281 : vector<16x128xf32>
    %283 = vector.broadcast %262 : vector<1x128xf32> to vector<16x128xf32>
    %284 = arith.addf %282, %283 : vector<16x128xf32>
    %c2_i32_90 = arith.constant 2 : i32
    %c0_i32_91 = arith.constant 0 : i32
    %c0_i32_92 = arith.constant 0 : i32
    %c0_i32_93 = arith.constant 0 : i32
    %c0_i32_94 = arith.constant 0 : i32
    %285 = tpu.memref_slice %arg2[%c2_i32_90, %c0_i32_93, %c0_i32_94] : memref<3x128x768xbf16, #tpu.memory_space<any>> -> memref<1x128x768xbf16, #tpu.memory_space<any>>
    %286 = tpu.memref_squeeze %285 : memref<1x128x768xbf16, #tpu.memory_space<any>> -> memref<128x768xbf16, #tpu.memory_space<any>>
    %c0_i32_95 = arith.constant 0 : i32
    %c0_i32_96 = arith.constant 0 : i32
    %287 = tpu.memref_slice %arg4[%c0_i32_91, %c0_i32_95, %c0_i32_96] : memref<2x128x768xbf16, #tpu.memory_space<vmem>> -> memref<1x128x768xbf16, #tpu.memory_space<vmem>>
    %288 = tpu.memref_squeeze %287 : memref<1x128x768xbf16, #tpu.memory_space<vmem>> -> memref<128x768xbf16, #tpu.memory_space<vmem>>
    %289 = tpu.memref_slice %arg5[%c0_i32_92] : memref<2x!tpu.dma_semaphore, #tpu.memory_space<semaphore_mem>> -> memref<1x!tpu.dma_semaphore, #tpu.memory_space<semaphore_mem>>
    %290 = tpu.memref_squeeze %289 : memref<1x!tpu.dma_semaphore, #tpu.memory_space<semaphore_mem>> -> memref<!tpu.dma_semaphore, #tpu.memory_space<semaphore_mem>>
    tpu.wait_dma2 semaphore(%290 : memref<!tpu.dma_semaphore, #tpu.memory_space<semaphore_mem>>) src(%286 : memref<128x768xbf16, #tpu.memory_space<any>>) dst(%288 : memref<128x768xbf16, #tpu.memory_space<vmem>>)
    %c32 = arith.constant 32 : index
    %c0_97 = arith.constant 0 : index
    %291 = vector.load %arg0[%c32, %c0_97] : memref<45x128xf32, #tpu.memory_space<vmem>>, vector<8x128xf32>
    %c0_98 = arith.constant 0 : index
    %c0_99 = arith.constant 0 : index
    %c0_100 = arith.constant 0 : index
    %292 = vector.load %arg4[%c0_98, %c0_99, %c0_100] : memref<2x128x768xbf16, #tpu.memory_space<vmem>>, vector<1x128x384xbf16>
    %293 = vector.shape_cast %292 : vector<1x128x384xbf16> to vector<128x384xbf16>
    %294 = arith.extf %293 : vector<128x384xbf16> to vector<128x384xf32>
    %c0_101 = arith.constant 0 : index
    %c0_102 = arith.constant 0 : index
    %c384_103 = arith.constant 384 : index
    %295 = vector.load %arg4[%c0_101, %c0_102, %c384_103] : memref<2x128x768xbf16, #tpu.memory_space<vmem>>, vector<1x128x128xbf16>
    %296 = vector.shape_cast %295 : vector<1x128x128xbf16> to vector<128x128xbf16>
    %297 = arith.extf %296 : vector<128x128xbf16> to vector<128x128xf32>
    %c0_104 = arith.constant 0 : index
    %c0_105 = arith.constant 0 : index
    %c512_106 = arith.constant 512 : index
    %298 = vector.load %arg4[%c0_104, %c0_105, %c512_106] : memref<2x128x768xbf16, #tpu.memory_space<vmem>>, vector<1x128x128xbf16>
    %299 = vector.shape_cast %298 : vector<1x128x128xbf16> to vector<128x128xbf16>
    %300 = arith.extf %299 : vector<128x128xbf16> to vector<128x128xf32>
    %c0_107 = arith.constant 0 : index
    %c0_108 = arith.constant 0 : index
    %c640_109 = arith.constant 640 : index
    %301 = vector.load %arg4[%c0_107, %c0_108, %c640_109] : memref<2x128x768xbf16, #tpu.memory_space<vmem>>, vector<1x128x128xbf16>
    %302 = vector.shape_cast %301 : vector<1x128x128xbf16> to vector<128x128xbf16>
    %303 = arith.extf %302 : vector<128x128xbf16> to vector<128x128xf32>
    %cst_110 = arith.constant dense<0.000000e+00> : vector<16x384xf32>
    %304 = tpu.matmul %284, %294, %cst_110 {dimension_numbers = #tpu.dot_dimension_numbers<[1], [0], [0], [1], [0, 0, 1, 1], [], []>} : vector<16x128xf32>, vector<128x384xf32>, vector<16x384xf32> -> vector<16x384xf32>
    %305 = vector.extract_strided_slice %304 {offsets = [0, 0], sizes = [16, 128], strides = [1, 1]} : vector<16x384xf32> to vector<16x128xf32>
    %306 = vector.extract_strided_slice %291 {offsets = [0, 0], sizes = [1, 128], strides = [1, 1]} : vector<8x128xf32> to vector<1x128xf32>
    %307 = vector.broadcast %306 : vector<1x128xf32> to vector<16x128xf32>
    %308 = arith.addf %305, %307 : vector<16x128xf32>
    %309 = vector.extract_strided_slice %304 {offsets = [0, 128], sizes = [16, 128], strides = [1, 1]} : vector<16x384xf32> to vector<16x128xf32>
    %310 = vector.extract_strided_slice %291 {offsets = [1, 0], sizes = [1, 128], strides = [1, 1]} : vector<8x128xf32> to vector<1x128xf32>
    %311 = vector.broadcast %310 : vector<1x128xf32> to vector<16x128xf32>
    %312 = arith.addf %309, %311 : vector<16x128xf32>
    %313 = vector.extract_strided_slice %304 {offsets = [0, 256], sizes = [16, 128], strides = [1, 1]} : vector<16x384xf32> to vector<16x128xf32>
    %314 = vector.extract_strided_slice %291 {offsets = [2, 0], sizes = [1, 128], strides = [1, 1]} : vector<8x128xf32> to vector<1x128xf32>
    %315 = vector.broadcast %314 : vector<1x128xf32> to vector<16x128xf32>
    %316 = arith.addf %313, %315 : vector<16x128xf32>
    %317 = arith.mulf %308, %312 : vector<16x128xf32>
    %cst_111 = arith.constant dense<0.000000e+00> : vector<16xf32>
    %318 = vector.multi_reduction <add>, %317, %cst_111 [1] : vector<16x128xf32> to vector<16xf32>
    %319 = vector.shape_cast %318 : vector<16xf32> to vector<16x1xf32>
    %320 = vector.extract_strided_slice %312 {offsets = [8, 0], sizes = [8, 128], strides = [1, 1]} : vector<16x128xf32> to vector<8x128xf32>
    %321 = vector.extract_strided_slice %312 {offsets = [0, 0], sizes = [8, 128], strides = [1, 1]} : vector<16x128xf32> to vector<8x128xf32>
    %322 = tpu.concatenate %320, %321 in 0 : vector<8x128xf32>, vector<8x128xf32> -> vector<16x128xf32>
    %323 = arith.mulf %308, %322 : vector<16x128xf32>
    %cst_112 = arith.constant dense<0.000000e+00> : vector<16xf32>
    %324 = vector.multi_reduction <add>, %323, %cst_112 [1] : vector<16x128xf32> to vector<16xf32>
    %325 = vector.shape_cast %324 : vector<16xf32> to vector<16x1xf32>
    %326 = arith.maximumf %319, %325 : vector<16x1xf32>
    %327 = arith.subf %319, %326 : vector<16x1xf32>
    %328 = math.exp %327 : vector<16x1xf32>
    %329 = arith.subf %325, %326 : vector<16x1xf32>
    %330 = math.exp %329 : vector<16x1xf32>
    %331 = arith.addf %328, %330 : vector<16x1xf32>
    %332 = tpu.reciprocal %331 {approx = true} : vector<16x1xf32> -> vector<16x1xf32>
    %333 = arith.mulf %328, %332 : vector<16x1xf32>
    %334 = vector.broadcast %333 : vector<16x1xf32> to vector<16x128xf32>
    %335 = arith.mulf %334, %316 : vector<16x128xf32>
    %336 = arith.mulf %330, %332 : vector<16x1xf32>
    %337 = vector.extract_strided_slice %316 {offsets = [8, 0], sizes = [8, 128], strides = [1, 1]} : vector<16x128xf32> to vector<8x128xf32>
    %338 = vector.extract_strided_slice %316 {offsets = [0, 0], sizes = [8, 128], strides = [1, 1]} : vector<16x128xf32> to vector<8x128xf32>
    %339 = tpu.concatenate %337, %338 in 0 : vector<8x128xf32>, vector<8x128xf32> -> vector<16x128xf32>
    %340 = vector.broadcast %336 : vector<16x1xf32> to vector<16x128xf32>
    %341 = arith.mulf %340, %339 : vector<16x128xf32>
    %342 = arith.addf %335, %341 : vector<16x128xf32>
    %cst_113 = arith.constant dense<0.000000e+00> : vector<16x128xf32>
    %343 = tpu.matmul %342, %297, %cst_113 {dimension_numbers = #tpu.dot_dimension_numbers<[1], [0], [0], [1], [0, 0, 1, 1], [], []>} : vector<16x128xf32>, vector<128x128xf32>, vector<16x128xf32> -> vector<16x128xf32>
    %344 = vector.extract_strided_slice %291 {offsets = [3, 0], sizes = [1, 128], strides = [1, 1]} : vector<8x128xf32> to vector<1x128xf32>
    %345 = vector.broadcast %344 : vector<1x128xf32> to vector<16x128xf32>
    %346 = arith.addf %343, %345 : vector<16x128xf32>
    %347 = arith.addf %284, %346 : vector<16x128xf32>
    %348 = vector.extract_strided_slice %291 {offsets = [6, 0], sizes = [1, 128], strides = [1, 1]} : vector<8x128xf32> to vector<1x128xf32>
    %349 = vector.extract_strided_slice %291 {offsets = [7, 0], sizes = [1, 128], strides = [1, 1]} : vector<8x128xf32> to vector<1x128xf32>
    %cst_114 = arith.constant dense<0.000000e+00> : vector<16xf32>
    %350 = vector.multi_reduction <add>, %347, %cst_114 [1] : vector<16x128xf32> to vector<16xf32>
    %351 = vector.shape_cast %350 : vector<16xf32> to vector<16x1xf32>
    %cst_115 = arith.constant 1.280000e+02 : f32
    %352 = vector.broadcast %cst_115 : f32 to vector<16x1xf32>
    %353 = arith.divf %351, %352 : vector<16x1xf32>
    %354 = vector.broadcast %353 : vector<16x1xf32> to vector<16x128xf32>
    %355 = arith.subf %347, %354 : vector<16x128xf32>
    %356 = arith.mulf %355, %355 : vector<16x128xf32>
    %cst_116 = arith.constant dense<0.000000e+00> : vector<16xf32>
    %357 = vector.multi_reduction <add>, %356, %cst_116 [1] : vector<16x128xf32> to vector<16xf32>
    %358 = vector.shape_cast %357 : vector<16xf32> to vector<16x1xf32>
    %cst_117 = arith.constant 1.280000e+02 : f32
    %359 = vector.broadcast %cst_117 : f32 to vector<16x1xf32>
    %360 = arith.divf %358, %359 : vector<16x1xf32>
    %361 = vector.broadcast %353 : vector<16x1xf32> to vector<16x128xf32>
    %362 = arith.subf %347, %361 : vector<16x128xf32>
    %cst_118 = arith.constant 9.99999974E-6 : f32
    %363 = vector.broadcast %cst_118 : f32 to vector<16x1xf32>
    %364 = arith.addf %360, %363 : vector<16x1xf32>
    %365 = math.rsqrt %364 : vector<16x1xf32>
    %366 = vector.broadcast %365 : vector<16x1xf32> to vector<16x128xf32>
    %367 = arith.mulf %362, %366 : vector<16x128xf32>
    %368 = vector.broadcast %348 : vector<1x128xf32> to vector<16x128xf32>
    %369 = arith.mulf %367, %368 : vector<16x128xf32>
    %370 = vector.broadcast %349 : vector<1x128xf32> to vector<16x128xf32>
    %371 = arith.addf %369, %370 : vector<16x128xf32>
    %cst_119 = arith.constant dense<0.000000e+00> : vector<16x128xf32>
    %372 = tpu.matmul %371, %300, %cst_119 {dimension_numbers = #tpu.dot_dimension_numbers<[1], [0], [0], [1], [0, 0, 1, 1], [], []>} : vector<16x128xf32>, vector<128x128xf32>, vector<16x128xf32> -> vector<16x128xf32>
    %373 = vector.extract_strided_slice %291 {offsets = [4, 0], sizes = [1, 128], strides = [1, 1]} : vector<8x128xf32> to vector<1x128xf32>
    %374 = vector.broadcast %373 : vector<1x128xf32> to vector<16x128xf32>
    %375 = arith.addf %372, %374 : vector<16x128xf32>
    %cst_120 = arith.constant 0.000000e+00 : f32
    %376 = vector.broadcast %cst_120 : f32 to vector<16x128xf32>
    %377 = arith.maximumf %375, %376 : vector<16x128xf32>
    %cst_121 = arith.constant dense<0.000000e+00> : vector<16x128xf32>
    %378 = tpu.matmul %377, %303, %cst_121 {dimension_numbers = #tpu.dot_dimension_numbers<[1], [0], [0], [1], [0, 0, 1, 1], [], []>} : vector<16x128xf32>, vector<128x128xf32>, vector<16x128xf32> -> vector<16x128xf32>
    %379 = vector.extract_strided_slice %291 {offsets = [5, 0], sizes = [1, 128], strides = [1, 1]} : vector<8x128xf32> to vector<1x128xf32>
    %380 = vector.broadcast %379 : vector<1x128xf32> to vector<16x128xf32>
    %381 = arith.addf %378, %380 : vector<16x128xf32>
    %382 = arith.addf %371, %381 : vector<16x128xf32>
    %383 = vector.extract_strided_slice %291 {offsets = [6, 0], sizes = [1, 128], strides = [1, 1]} : vector<8x128xf32> to vector<1x128xf32>
    %384 = vector.extract_strided_slice %291 {offsets = [7, 0], sizes = [1, 128], strides = [1, 1]} : vector<8x128xf32> to vector<1x128xf32>
    %cst_122 = arith.constant dense<0.000000e+00> : vector<16xf32>
    %385 = vector.multi_reduction <add>, %382, %cst_122 [1] : vector<16x128xf32> to vector<16xf32>
    %386 = vector.shape_cast %385 : vector<16xf32> to vector<16x1xf32>
    %cst_123 = arith.constant 1.280000e+02 : f32
    %387 = vector.broadcast %cst_123 : f32 to vector<16x1xf32>
    %388 = arith.divf %386, %387 : vector<16x1xf32>
    %389 = vector.broadcast %388 : vector<16x1xf32> to vector<16x128xf32>
    %390 = arith.subf %382, %389 : vector<16x128xf32>
    %391 = arith.mulf %390, %390 : vector<16x128xf32>
    %cst_124 = arith.constant dense<0.000000e+00> : vector<16xf32>
    %392 = vector.multi_reduction <add>, %391, %cst_124 [1] : vector<16x128xf32> to vector<16xf32>
    %393 = vector.shape_cast %392 : vector<16xf32> to vector<16x1xf32>
    %cst_125 = arith.constant 1.280000e+02 : f32
    %394 = vector.broadcast %cst_125 : f32 to vector<16x1xf32>
    %395 = arith.divf %393, %394 : vector<16x1xf32>
    %396 = vector.broadcast %388 : vector<16x1xf32> to vector<16x128xf32>
    %397 = arith.subf %382, %396 : vector<16x128xf32>
    %cst_126 = arith.constant 9.99999974E-6 : f32
    %398 = vector.broadcast %cst_126 : f32 to vector<16x1xf32>
    %399 = arith.addf %395, %398 : vector<16x1xf32>
    %400 = math.rsqrt %399 : vector<16x1xf32>
    %401 = vector.broadcast %400 : vector<16x1xf32> to vector<16x128xf32>
    %402 = arith.mulf %397, %401 : vector<16x128xf32>
    %403 = vector.broadcast %383 : vector<1x128xf32> to vector<16x128xf32>
    %404 = arith.mulf %402, %403 : vector<16x128xf32>
    %405 = vector.broadcast %384 : vector<1x128xf32> to vector<16x128xf32>
    %406 = arith.addf %404, %405 : vector<16x128xf32>
    %407 = vector.shape_cast %406 : vector<16x128xf32> to vector<2x1024xf32>
    %c0_127 = arith.constant 0 : index
    %c0_128 = arith.constant 0 : index
    %408 = vector.load %arg1[%c0_127, %c0_128] : memref<1024x2xf32, #tpu.memory_space<vmem>>, vector<1024x2xf32>
    %cst_129 = arith.constant dense<0.000000e+00> : vector<2x2xf32>
    %409 = tpu.matmul %407, %408, %cst_129 {dimension_numbers = #tpu.dot_dimension_numbers<[1], [0], [0], [1], [0, 0, 1, 1], [], []>} : vector<2x1024xf32>, vector<1024x2xf32>, vector<2x2xf32> -> vector<2x2xf32>
    %410 = vector.broadcast %8 : vector<1x2xf32> to vector<2x2xf32>
    %411 = arith.addf %409, %410 : vector<2x2xf32>
    %c0_130 = arith.constant 0 : index
    %c0_131 = arith.constant 0 : index
    %412 = vector.load %arg3[%c0_130, %c0_131] : memref<2x2xf32, #tpu.memory_space<vmem>>, vector<2x2xf32>
    tpu.vector_store %arg3[%c0_130, %c0_131], %411 {strides = array<i32>} : memref<2x2xf32, #tpu.memory_space<vmem>>, vector<2x2xf32>,
    return
  }
}

</mosaic_0001>

<bundles_post_ra>
// kernel: tpu_custom_call.1
= control target key start
LH: loop header
LB: loop body
LE: loop exit
PB: predicated region body
PF: predicated region fallthrough
CT: control target
= control target key end

     0   :  { %8 = vsyncpa [#allocation5], 0  ;;  %s17_s12 = sld [smem:[#allocation0]]   ;;  %s4169_s13 = smov [#allocation2]   ;;  %v4170_v0 = vmov 1   ;;  %v4172_v1 = vmov 0   ;;  %v62_v7 = vlaneseq  ;;  %s4835_s0 = inlined_call_operand.vmem [shape: f32[45,128], index: 0, kind: input, shape index: {}]   ;;  %s4836_s1 = inlined_call_operand.vmem [shape: f32[1024,2], index: 1, kind: input, shape index: {}]   ;;  %s4837_s2 = inlined_call_operand.hbm [shape: bf16[3,128,768], index: 2, kind: input, shape index: {}]   ;;  %s4838_s3 = inlined_call_operand.hbm [shape: f32[2,2], index: 3, kind: output, shape index: {}]  }
   0x1   :  { %s4209_s14 = sshll.u32 %s4169_s13, 4  ;;  %4076 = vset.pattern.permute.xlu1 %v4170_v0  ;;  %s4171_s15 = smov 768   ;;  %4075 = vset.pattern.permute.xlu0 %v4172_v1  ;;  %v4181_v4 = vmov 2   ;;  %s26_s14 = int_to_ptr.vmem [resolvable:$true] %s4209_s14 }
   0x2   :  { %29 = sst [smem:[#allocation7]] %s4171_s15  ;;  %s4173_s16 = smov 6   ;;  %v4257_v8 = vshrl.u32 %v62_v7, 7 }
   0x3   :  { %31 = sst [smem:[#allocation7 + $0x1]] %s4171_s15  ;;  %s4174_s17 = smov 64  }
   0x4   :  { %33 = sst [smem:[#allocation7 + $0x2]] %s4173_s16  ;;  %s4175_s19 = smov 128   ;;  %v4260_v9 = vsub.s32 1, %v4257_v8  ;;  %v4263_v10 = vsub.s32 0, %v4257_v8  ;;  %v4266_v13 = vsub.s32 2, %v4257_v8  ;;  %v4272_v19 = vsub.s32 3, %v4257_v8 }
   0x5   :  { %35 = sst [smem:[#allocation7 + $0x3]] %s4174_s17  ;;  %s4176_s21 = smov 2  }
   0x6   :  { %s2662_s18 = sshll.u32 %s17_s12, 26  ;;  %37 = sst [smem:[#allocation7 + $0x4]] %s4175_s19 }
   0x7   :  { %s4217_s20 = sadd.s32 134217728, %s2662_s18  ;;  %39 = sst [smem:[#allocation7 + $0x5]] %s4176_s21 }
   0x8   :  { %s4177_s22 = smov 384   ;;  %43 = sst [smem:[#allocation7 + $0x7]] %s4174_s17 }
   0x9   :  { %41 = sst [smem:[#allocation7 + $0x6]] %s4177_s22  ;;  %s4178_s23 = smov 4  }
   0xa   :  { %45 = sst [smem:[#allocation7 + $0x8]] %s4178_s23  ;;  %s4179_s24 = smov [#allocation3]  }
   0xb   :  { %s4180_s25 = smov [#allocation6]   ;;  %s4182_s5 = smov [#allocation2 + $0x180]  }
   0xc   :  { %47 = dma.general %s4837_s2, 6144, %s26_s14, %s4179_s24, %s4180_s25, [#allocation7], %s4217_s20, 0  }
   0xd   :  { %124 = sst [smem:[#allocation9]] %s4171_s15  ;;  %v48_v2 = vld [vmem:[%s4835_s0] sm:$0xff]  ;;  %v49_v3 = vld [vmem:[%s4835_s0 + $0x8] sm:$0xff]  ;;  %s120_s6 = sshll.u32 %s4182_s5, 4  ;;  %s121_s6 = int_to_ptr.vmem [resolvable:$true] %s120_s6 }
   0xe   :  { %126 = sst [smem:[#allocation9 + $0x1]] %s4171_s15  ;;  %69 = vperm.xlu1 %4076, %v48_v2   ;;  %54 = vperm.xlu0 %4075, %v48_v2   ;;  %v4248_v5 = vld [vmem:[%s4835_s0 + $0x2c] ss:$0 sm:$0xff]  ;;  %s106_s11 = scalar_lea.hbm %s4837_s2, 6144  ;;  %v50_v6 = vld [vmem:[%s4835_s0 + $0x28] sm:$0xf] }
   0xf   :  { %128 = sst [smem:[#allocation9 + $0x2]] %s4173_s16  ;;  %s4183_s18 = smov [#allocation3 + $0x1]   ;;  %v79_v14 = vrot.slane %v50_v6, %v4260_v9  ;;  %v65_v15 = vrot.slane %v50_v6, %v4263_v10  ;;  %v95_v18 = vrot.slane %v50_v6, %v4266_v13  ;;  %v103_v24 = vrot.slane %v50_v6, %v4272_v19 }
  0x10   :  { %130 = sst [smem:[#allocation9 + $0x3]] %s4174_s17  ;;  %s4184_s25 = smov [#allocation8]  }
  0x11   :  { %132 = sst [smem:[#allocation9 + $0x4]] %s4175_s19 }
  0x12   :  { %134 = sst [smem:[#allocation9 + $0x5]] %s4176_s21  ;;  %73 = vperm.xlu1 %4076, %v49_v3   ;;  %59 = vperm.xlu0 %4075, %v49_v3  }
  0x13   :  { %136 = sst [smem:[#allocation9 + $0x6]] %s4177_s22 }
  0x14   :  { %138 = sst [smem:[#allocation9 + $0x7]] %s4174_s17 }
  0x15   :  { %140 = sst [smem:[#allocation9 + $0x8]] %s4178_s23 }
  0x16   :  { %4078 = vset.pattern.permute.xlu1 %v4181_v4  ;;  %4077 = vset.pattern.permute.xlu0 %v4181_v4  ;;  %142 = dma.general %s106_s11, 6144, %s121_s6, %s4183_s18, %s4184_s25, [#allocation9], %s4217_s20, 0  }
  0x17   :  { %89 = vperm.xlu1 %4078, %v49_v3   ;;  %85 = vperm.xlu0 %4077, %v48_v2  }
  0x8d   :  { %v70_v11 = vpop.permute.xlu1 %69  ;;  %v55_v12 = vpop.permute.xlu0 %54 }
  0x8e   :  { %v80_v20 = vmul.f32 %v79_v14, %v70_v11  ;;  %v66_v21 = vmul.f32 %v65_v15, %v55_v12 }
  0x90   :  { %v82_v27 = vadd.f32 %v80_v20, %v66_v21 }
  0x91   :  { %v74_v16 = vpop.permute.xlu1 %73  ;;  %v60_v17 = vpop.permute.xlu0 %59 }
  0x92   :  { %v81_v22 = vmul.f32 %v79_v14, %v74_v16  ;;  %v67_v23 = vmul.f32 %v65_v15, %v60_v17 }
  0x94   :  { %v83_v28 = vadd.f32 %v81_v22, %v67_v23 }
  0x96   :  { %v90_v25 = vpop.permute.xlu1 %89  ;;  %v86_v26 = vpop.permute.xlu0 %85 }
  0x97   :  { %v97_v29 = vmul.f32 %v95_v18, %v90_v25  ;;  %v96_v30 = vmul.f32 %v95_v18, %v86_v26 }
  0x99   :  { %v99_v31 = vadd.f32 %v97_v29, %v83_v28  ;;  %v98_v32 = vadd.f32 %v96_v30, %v82_v27 }
  0x9b   :  { %v4275_v33 = vadd.f32 %v103_v24, %v99_v31  ;;  %v4277_v34 = vadd.f32 %v103_v24, %v98_v32 }
  0x9c   :  { %4161 = dma.done.wait [#allocation3], 6144 }
  0x9d   :  { %4162 = vsyncadd [#allocation3], 4294961152  ;;  %3059 = vmatprep.mubr.f32.mxu1 %v4277_v34  ;;  %822 = sst [smem:[#allocation11]] %s4171_s15  ;;  %v4185_v35 = vmov 0.0   ;;  %v149_v36 = vld [vmem:[#allocation2 + $0x8] sm:$0xff]  ;;  %v148_v37 = vld [vmem:[#allocation2] sm:$0xff] }
  0x9e   :  { %356 = vmatprep.mubr.f32.mxu0 %v4185_v35  ;;  %824 = sst [smem:[#allocation11 + $0x1]] %s4171_s15  ;;  %v152_v38 = vld [vmem:[#allocation2 + $0x38] sm:$0xff]  ;;  %3448 = vmatprep.subr.bf16.mxu0 %v149_v36  ;;  %v151_v39 = vld [vmem:[#allocation2 + $0x30] sm:$0xff]  ;;  %v155_v40 = vld [vmem:[#allocation2 + $0x68] sm:$0xff] }
  0x9f   :  { %826 = sst [smem:[#allocation11 + $0x2]] %s4173_s16  ;;  %3450 = vmatpush1.bf16.msra.mxu0 %v148_v37  ;;  %v150_v41 = vld [vmem:[#allocation2 + $0x10] sm:$0xff]  ;;  %v153_v42 = vld [vmem:[#allocation2 + $0x40] sm:$0xff]  ;;  %v158_v44 = vld [vmem:[#allocation2 + $0x98] sm:$0xff] }
  0xa0   :  { %828 = sst [smem:[#allocation11 + $0x3]] %s4174_s17  ;;  %3452 = vmatprep.subr.bf16.mxu0 %v152_v38  ;;  %3480 = vmatprep.subr.bf16.mxu1 %v150_v41  ;;  %v154_v43 = vld [vmem:[#allocation2 + $0x60] sm:$0xff]  ;;  %v156_v45 = vld [vmem:[#allocation2 + $0x70] sm:$0xff]  ;;  %v161_v47 = vld [vmem:[#allocation2 + $0xc8] sm:$0xff] }
  0xa1   :  { %830 = sst [smem:[#allocation11 + $0x4]] %s4175_s19  ;;  %3482 = vmatpush3.bf16.msra.mxu1 %v150_v41  ;;  %v157_v46 = vld [vmem:[#allocation2 + $0x90] sm:$0xff]  ;;  %v159_v48 = vld [vmem:[#allocation2 + $0xa0] sm:$0xff]  ;;  %v164_v50 = vld [vmem:[#allocation2 + $0xf8] sm:$0xff] }
  0xa2   :  { %832 = sst [smem:[#allocation11 + $0x5]] %s4176_s21  ;;  %3484 = vmatprep.subr.bf16.mxu1 %v153_v42  ;;  %v160_v49 = vld [vmem:[#allocation2 + $0xc0] sm:$0xff]  ;;  %v162_v51 = vld [vmem:[#allocation2 + $0xd0] sm:$0xff]  ;;  %v167_v53 = vld [vmem:[#allocation2 + $0x128] sm:$0xff]  ;;  %s806_s21 = scalar_lea.hbm %s4837_s2, 12288 }
  0xa3   :  { %834 = sst [smem:[#allocation11 + $0x6]] %s4177_s22  ;;  %3454 = vmatpush1.bf16.msra.mxu0 %v151_v39  ;;  %v163_v52 = vld [vmem:[#allocation2 + $0xf0] sm:$0xff]  ;;  %v165_v54 = vld [vmem:[#allocation2 + $0x100] sm:$0xff]  ;;  %v170_v56 = vld [vmem:[#allocation2 + $0x158] sm:$0xff]  ;;  %s4186_s22 = smov [#allocation10]  }
  0xa4   :  { %836 = sst [smem:[#allocation11 + $0x7]] %s4174_s17  ;;  %3456 = vmatprep.subr.bf16.mxu0 %v155_v40  ;;  %v166_v55 = vld [vmem:[#allocation2 + $0x120] sm:$0xff]  ;;  %v168_v57 = vld [vmem:[#allocation2 + $0x130] sm:$0xff]  ;;  %v220_v16 = vld [vmem:[#allocation2 + $0x18] sm:$0xff] }
  0xa5   :  { %838 = sst [smem:[#allocation11 + $0x8]] %s4178_s23  ;;  %3486 = vmatpush3.bf16.msra.mxu1 %v153_v42  ;;  %v169_v58 = vld [vmem:[#allocation2 + $0x150] sm:$0xff]  ;;  %v171_v59 = vld [vmem:[#allocation2 + $0x160] sm:$0xff]  ;;  %v221_v17 = vld [vmem:[#allocation2 + $0x48] sm:$0xff] }
  0xa6   :  { %3488 = vmatprep.subr.bf16.mxu1 %v156_v45  ;;  %v4297_v60 = vld [vmem:[%s4835_s0 + $0x10] sm:$0xff]  ;;  %v222_v18 = vld [vmem:[#allocation2 + $0x78] sm:$0xff]  ;;  %v223_v20 = vld [vmem:[#allocation2 + $0xa8] sm:$0xff] }
  0xa7   :  { %3458 = vmatpush1.bf16.msra.mxu0 %v154_v43  ;;  %v447_v61 = vrot.slane %v4297_v60, %v4263_v10  ;;  %v453_v62 = vrot.slane %v4297_v60, %v4260_v9  ;;  %v224_v21 = vld [vmem:[#allocation2 + $0xd8] sm:$0xff]  ;;  %v225_v23 = vld [vmem:[#allocation2 + $0x108] sm:$0xff] }
  0xa8   :  { %3460 = vmatprep.subr.bf16.mxu0 %v158_v44  ;;  %v226_v25 = vld [vmem:[#allocation2 + $0x138] sm:$0xff]  ;;  %v227_v26 = vld [vmem:[#allocation2 + $0x168] sm:$0xff] }
  0xa9   :  { %3490 = vmatpush3.bf16.msra.mxu1 %v156_v45 }
  0xaa   :  { %3492 = vmatprep.subr.bf16.mxu1 %v159_v48 }
  0xab   :  { %3462 = vmatpush1.bf16.msra.mxu0 %v157_v46 }
  0xac   :  { %3464 = vmatprep.subr.bf16.mxu0 %v161_v47 }
  0xad   :  { %3494 = vmatpush3.bf16.msra.mxu1 %v159_v48 }
  0xae   :  { %3496 = vmatprep.subr.bf16.mxu1 %v162_v51 }
  0xaf   :  { %3466 = vmatpush1.bf16.msra.mxu0 %v160_v49 }
  0xb0   :  { %3468 = vmatprep.subr.bf16.mxu0 %v164_v50  ;;  %v459_v50 = vrot.slane %v4297_v60, %v4266_v13 }
  0xb1   :  { %3498 = vmatpush3.bf16.msra.mxu1 %v162_v51 }
  0xb2   :  { %3500 = vmatprep.subr.bf16.mxu1 %v165_v54 }
  0xb3   :  { %3470 = vmatpush1.bf16.msra.mxu0 %v163_v52 }
  0xb4   :  { %3472 = vmatprep.subr.bf16.mxu0 %v167_v53 }
  0xb5   :  { %3502 = vmatpush3.bf16.msra.mxu1 %v165_v54 }
  0xb6   :  { %3504 = vmatprep.subr.bf16.mxu1 %v168_v57 }
  0xb7   :  { %3474 = vmatpush1.bf16.msra.mxu0 %v166_v55 }
  0xb8   :  { %3476 = vmatprep.subr.bf16.mxu0 %v170_v56 }
  0xb9   :  { %3506 = vmatpush3.bf16.msra.mxu1 %v168_v57 }
  0xba   :  { %3508 = vmatprep.subr.bf16.mxu1 %v171_v59 }
  0xbb   :  { %3478 = vmatpush1.bf16.msra.mxu0 %v169_v58 }
  0xbc   :  { %3512 = vmatprep.subr.bf16.mxu0 %v220_v16 }
  0xbd   :  { %3510 = vmatpush3.bf16.msra.mxu1 %v171_v59 }
  0xbe   :  { %357 = vmatmul.mubr.f32.vlgmr.msra.gmra.mrb[0].mxu0 %v4277_v34 }
  0xbf   :  { %362 = vmatprep.mubr.f32.mxu0 %v4185_v35  ;;  %3514 = vmatpush3.bf16.msra.mxu0 %v220_v16  ;;  %v246_v16 = vld [vmem:[#allocation2 + $0x80] sm:$0xff] }
  0xc0   :  { %3060 = vmatmul.mubr.f32.vlgmr.msra.gmra.mrb[0].mxu1 %v4275_v33  ;;  %3516 = vmatprep.subr.bf16.mxu0 %v221_v17 }
  0xc2   :  { %363 = vmatmul.mubr.f32.gmra.mrb[2].mxu0 %v4275_v33 }
  0xc3   :  { %3518 = vmatpush3.bf16.msra.mxu0 %v221_v17 }
  0xc4   :  { %3520 = vmatprep.subr.bf16.mxu0 %v222_v18 }
  0xc7   :  { %3522 = vmatpush3.bf16.msra.mxu0 %v222_v18 }
  0xc8   :  { %3524 = vmatprep.subr.bf16.mxu0 %v223_v20 }
  0xcb   :  { %3526 = vmatpush3.bf16.msra.mxu0 %v223_v20 }
  0xcc   :  { %3528 = vmatprep.subr.bf16.mxu0 %v224_v21 }
  0xcf   :  { %3530 = vmatpush3.bf16.msra.mxu0 %v224_v21 }
  0xd0   :  { %3532 = vmatprep.subr.bf16.mxu0 %v225_v23 }
  0xd3   :  { %3534 = vmatpush3.bf16.msra.mxu0 %v225_v23 }
  0xd4   :  { %3536 = vmatprep.subr.bf16.mxu0 %v226_v25 }
  0xd7   :  { %3538 = vmatpush3.bf16.msra.mxu0 %v226_v25  ;;  %v248_v25 = vld [vmem:[#allocation2 + $0xe0] sm:$0xff] }
  0xd8   :  { %3540 = vmatprep.subr.bf16.mxu0 %v227_v26 }
  0xdb   :  { %3542 = vmatpush3.bf16.msra.mxu0 %v227_v26  ;;  %v249_v26 = vld [vmem:[#allocation2 + $0x110] sm:$0xff] }
 0x191   :  { %v358_v63 = vpop.f32.mrb[0].mxu0 }
 0x192   :  { %v448_v0 = vadd.f32 %v447_v61, %v358_v63  ;;  %v360_v1 = vpop.f32.mrb[1].mxu0 }
 0x193   :  { %v454_v2 = vadd.f32 %v453_v62, %v360_v1  ;;  %v3061_v22 = vpop.f32.mrb[0].mxu1 }
 0x194   :  { %v435_v24 = vpop.f32.mrb[1].mxu1  ;;  %v461_v51 = vadd.f32 %v3061_v22, %v459_v50 }
 0x195   :  { %v364_v3 = vpop.f32.mrb[2].mxu0  ;;  %v462_v4 = vmul.f32 %v454_v2, %v448_v0  ;;  %v460_v52 = vadd.f32 %v459_v50, %v435_v24 }
 0x196   :  { %v449_v6 = vadd.f32 %v447_v61, %v364_v3  ;;  %v366_v7 = vpop.f32.mrb[3].mxu0 }
 0x197   :  { %v455_v11 = vadd.f32 %v453_v62, %v366_v7  ;;  %464 = vadd.xlane.f32.xlu0 %v462_v4 }
 0x198   :  { %v469_v12 = vmul.f32 %v454_v2, %v449_v6  ;;  %v505_v2 = vrot.slane %v4297_v60, %v4272_v19 }
 0x199   :  { %v463_v14 = vmul.f32 %v455_v11, %v449_v6  ;;  %v468_v15 = vmul.f32 %v455_v11, %v448_v0 }
 0x19b   :  { %466 = vadd.xlane.f32.xlu1 %v463_v14  ;;  %470 = vadd.xlane.f32.xlu0 %v468_v15  ;;  %v244_v14 = vld [vmem:[#allocation2 + $0x20] sm:$0xff]  ;;  %v245_v15 = vld [vmem:[#allocation2 + $0x50] sm:$0xff] }
 0x19c   :  { %3544 = vmatprep.subr.bf16.mxu1 %v244_v14 }
 0x19d   :  { %3546 = vmatpush3.bf16.msra.mxu1 %v244_v14 }
 0x19e   :  { %3548 = vmatprep.subr.bf16.mxu1 %v245_v15 }
 0x19f   :  { %472 = vadd.xlane.f32.xlu1 %v469_v12 }
 0x1a1   :  { %3550 = vmatpush3.bf16.msra.mxu1 %v245_v15 }
 0x1a2   :  { %3552 = vmatprep.subr.bf16.mxu1 %v246_v16 }
 0x1a5   :  { %3554 = vmatpush3.bf16.msra.mxu1 %v246_v16 }
 0x224   :  { %v465_v27 = vpop.xlane.xlu0 %464 }
 0x228   :  { %v467_v28 = vpop.xlane.xlu1 %466  ;;  %v471_v29 = vpop.xlane.xlu0 %470 }
 0x229   :  { %v474_v30 = vmax.f32 %v465_v27, %v471_v29 }
 0x22b   :  { %v476_v31 = vsub.f32 %v465_v27, %v474_v30  ;;  %v482_v32 = vsub.f32 %v471_v29, %v474_v30  ;;  %v250_v27 = vld [vmem:[#allocation2 + $0x140] sm:$0xff]  ;;  %v268_v29 = vld [vmem:[#allocation2 + $0x28] sm:$0xff]  ;;  %v269_v30 = vld [vmem:[#allocation2 + $0x58] sm:$0xff] }
 0x22c   :  { %v473_v36 = vpop.xlane.xlu1 %472  ;;  %3576 = vmatprep.subr.bf16.mxu0 %v268_v29 }
 0x22d   :  { %v478_v37 = vmul.f32 1.442695, %v476_v31  ;;  %v484_v38 = vmul.f32 1.442695, %v482_v32  ;;  %v475_v39 = vmax.f32 %v467_v28, %v473_v36  ;;  %v270_v31 = vld [vmem:[#allocation2 + $0x88] sm:$0xff]  ;;  %v271_v32 = vld [vmem:[#allocation2 + $0xb8] sm:$0xff] }
 0x22f   :  { %4079 = vpow2.f32 %v478_v37  ;;  %v477_v40 = vsub.f32 %v467_v28, %v475_v39  ;;  %v483_v41 = vsub.f32 %v473_v36, %v475_v39  ;;  %v251_v28 = vld [vmem:[#allocation2 + $0x170] sm:$0xff]  ;;  %v272_v36 = vld [vmem:[#allocation2 + $0xe8] sm:$0xff]  ;;  %v273_v37 = vld [vmem:[#allocation2 + $0x118] sm:$0xff] }
 0x230   :  { %4081 = vpow2.f32 %v484_v38  ;;  %v274_v38 = vld [vmem:[#allocation2 + $0x148] sm:$0xff] }
 0x231   :  { %v480_v42 = vmul.f32 1.442695, %v477_v40  ;;  %v486_v43 = vmul.f32 1.442695, %v483_v41 }
 0x233   :  { %4083 = vpow2.f32 %v480_v42 }
 0x234   :  { %4085 = vpow2.f32 %v486_v43 }
 0x239   :  { %v4080_v44 = vpop.eup %4079 }
 0x23a   :  { %v4082_v45 = vpop.eup %4081 }
 0x23b   :  { %v488_v46 = vadd.f32 %v4082_v45, %v4080_v44 }
 0x23d   :  { %v4084_v47 = vpop.eup %4083  ;;  %4087 = vrcp.f32 %v488_v46  ;;  %v4313_v46 = vsub.s32 7, %v4257_v8 }
 0x23e   :  { %v4086_v48 = vpop.eup %4085 }
 0x23f   :  { %v489_v49 = vadd.f32 %v4086_v48, %v4084_v47 }
 0x241   :  { %4089 = vrcp.f32 %v489_v49 }
 0x247   :  { %v4088_v53 = vpop.eup %4087 }
 0x248   :  { %v496_v54 = vmul.f32 %v4088_v53, %v4082_v45  ;;  %v492_v55 = vmul.f32 %v4088_v53, %v4080_v44  ;;  %v4310_v45 = vsub.s32 6, %v4257_v8 }
 0x24a   :  { %v498_v56 = vmul.f32 %v496_v54, %v461_v51  ;;  %v494_v57 = vmul.f32 %v492_v55, %v460_v52 }
 0x24b   :  { %v4090_v58 = vpop.eup %4089 }
 0x24c   :  { %v493_v59 = vmul.f32 %v4090_v58, %v4084_v47  ;;  %v497_v61 = vmul.f32 %v4090_v58, %v4086_v48  ;;  %v500_v62 = vadd.f32 %v498_v56, %v494_v57  ;;  %v609_v47 = vrot.slane %v4297_v60, %v4310_v45  ;;  %v275_v57 = vld [vmem:[#allocation2 + $0x178] sm:$0xff] }
 0x24d   :  { %v4320_v58 = vsub.s32 4, %v4257_v8 }
 0x24e   :  { %v495_v63 = vmul.f32 %v493_v59, %v461_v51  ;;  %v499_v0 = vmul.f32 %v497_v61, %v460_v52  ;;  %3094 = vmatprep.mubr.f32.mxu0 %v500_v62  ;;  %v615_v52 = vrot.slane %v4297_v60, %v4313_v46 }
 0x24f   :  { %v621_v59 = vrot.slane %v4297_v60, %v4320_v58 }
 0x250   :  { %v501_v1 = vadd.f32 %v499_v0, %v495_v63 }
 0x252   :  { %3095 = vmatmul.mubr.f32.vlgmr.msra.gmra.mrb[4].mxu0 %v501_v1 }
 0x253   :  { %3578 = vmatpush3.bf16.msra.mxu0 %v268_v29 }
 0x254   :  { %3580 = vmatprep.subr.bf16.mxu0 %v269_v30 }
 0x257   :  { %3582 = vmatpush3.bf16.msra.mxu0 %v269_v30 }
 0x258   :  { %3584 = vmatprep.subr.bf16.mxu0 %v270_v31 }
 0x25b   :  { %3586 = vmatpush3.bf16.msra.mxu0 %v270_v31 }
 0x25c   :  { %3588 = vmatprep.subr.bf16.mxu0 %v271_v32 }
 0x25f   :  { %3590 = vmatpush3.bf16.msra.mxu0 %v271_v32 }
 0x260   :  { %3592 = vmatprep.subr.bf16.mxu0 %v272_v36 }
 0x263   :  { %3594 = vmatpush3.bf16.msra.mxu0 %v272_v36 }
 0x264   :  { %3596 = vmatprep.subr.bf16.mxu0 %v273_v37 }
 0x267   :  { %3598 = vmatpush3.bf16.msra.mxu0 %v273_v37 }
 0x268   :  { %3600 = vmatprep.subr.bf16.mxu0 %v274_v38 }
 0x26b   :  { %3602 = vmatpush3.bf16.msra.mxu0 %v274_v38 }
 0x26c   :  { %3604 = vmatprep.subr.bf16.mxu0 %v275_v57 }
 0x26f   :  { %3606 = vmatpush3.bf16.msra.mxu0 %v275_v57 }
 0x325   :  { %v3096_v3 = vpop.f32.mrb[4].mxu0 }
 0x326   :  { %v578_v4 = vadd.f32 %v3096_v3, %v505_v2  ;;  %v572_v6 = vpop.f32.mrb[5].mxu0  ;;  %v4325_v3 = vsub.s32 5, %v4257_v8 }
 0x327   :  { %v573_v7 = vadd.f32 %v572_v6, %v505_v2 }
 0x328   :  { %v582_v11 = vadd.f32 %v578_v4, %v4275_v33  ;;  %v702_v4 = vrot.slane %v4297_v60, %v4325_v3 }
 0x329   :  { %v581_v12 = vadd.f32 %v573_v7, %v4277_v34  ;;  %v247_v34 = vld [vmem:[#allocation2 + $0xb0] sm:$0xff] }
 0x32a   :  { %585 = vadd.xlane.f32.xlu1 %v582_v11  ;;  %3556 = vmatprep.subr.bf16.mxu1 %v247_v34  ;;  %840 = dma.general %s806_s21, 6144, %s26_s14, %s4179_s24, %s4186_s22, [#allocation11], %s4217_s20, 0  }
 0x32b   :  { %583 = vadd.xlane.f32.xlu0 %v581_v12  ;;  %3558 = vmatpush3.bf16.msra.mxu1 %v247_v34 }
 0x32c   :  { %3560 = vmatprep.subr.bf16.mxu1 %v248_v25 }
 0x32f   :  { %3562 = vmatpush3.bf16.msra.mxu1 %v248_v25 }
 0x330   :  { %3564 = vmatprep.subr.bf16.mxu1 %v249_v26 }
 0x333   :  { %3566 = vmatpush3.bf16.msra.mxu1 %v249_v26 }
 0x334   :  { %3568 = vmatprep.subr.bf16.mxu1 %v250_v27 }
 0x337   :  { %3570 = vmatpush3.bf16.msra.mxu1 %v250_v27 }
 0x338   :  { %3572 = vmatprep.subr.bf16.mxu1 %v251_v28 }
 0x33b   :  { %3574 = vmatpush3.bf16.msra.mxu1 %v251_v28 }
 0x3b7   :  { %v586_v17 = vpop.xlane.xlu1 %585 }
 0x3b8   :  { %v589_v18 = vmul.f32 0.0078125, %v586_v17  ;;  %v584_v20 = vpop.xlane.xlu0 %583 }
 0x3b9   :  { %v588_v21 = vmul.f32 0.0078125, %v584_v20 }
 0x3ba   :  { %v591_v22 = vsub.f32 %v582_v11, %v589_v18 }
 0x3bb   :  { %v590_v23 = vsub.f32 %v581_v12, %v588_v21 }
 0x3bc   :  { %v593_v33 = vmul.f32 %v591_v22, %v591_v22 }
 0x3bd   :  { %v592_v24 = vmul.f32 %v590_v23, %v590_v23 }
 0x3be   :  { %596 = vadd.xlane.f32.xlu1 %v593_v33 }
 0x3bf   :  { %594 = vadd.xlane.f32.xlu0 %v592_v24 }
 0x44b   :  { %v597_v39 = vpop.xlane.xlu1 %596 }
 0x44c   :  { %v599_v40 = vmul.f32 0.0078125, %v597_v39  ;;  %v595_v41 = vpop.xlane.xlu0 %594 }
 0x44d   :  { %v598_v42 = vmul.f32 0.0078125, %v595_v41 }
 0x44e   :  { %v601_v43 = vadd.f32 1e-05, %v599_v40 }
 0x44f   :  { %v600_v44 = vadd.f32 1e-05, %v598_v42 }
 0x450   :  { %4091 = vrsqrt.f32 %v601_v43 }
 0x451   :  { %4093 = vrsqrt.f32 %v600_v44 }
 0x45a   :  { %v4092_v48 = vpop.eup %4091 }
 0x45b   :  { %v4094_v49 = vpop.eup %4093  ;;  %v605_v50 = vmul.f32 %v4092_v48, %v591_v22 }
 0x45c   :  { %v604_v51 = vmul.f32 %v4094_v49, %v590_v23 }
 0x45d   :  { %v611_v53 = vmul.f32 %v609_v47, %v605_v50 }
 0x45e   :  { %v610_v54 = vmul.f32 %v609_v47, %v604_v51 }
 0x45f   :  { %v617_v56 = vadd.f32 %v615_v52, %v611_v53 }
 0x460   :  { %v616_v55 = vadd.f32 %v615_v52, %v610_v54 }
 0x462   :  { %3129 = vmatprep.mubr.f32.mxu1 %v616_v55 }
 0x463   :  { %3130 = vmatmul.mubr.f32.vlgmr.msra.gmra.mrb[2].mxu1 %v617_v56 }
 0x536   :  { %v3131_v61 = vpop.f32.mrb[2].mxu1 }
 0x537   :  { %v694_v62 = vadd.f32 %v3131_v61, %v621_v59  ;;  %v688_v63 = vpop.f32.mrb[3].mxu1 }
 0x538   :  { %v689_v0 = vadd.f32 %v688_v63, %v621_v59 }
 0x539   :  { %v698_v2 = vmax.f32 %v694_v62, 0.0 }
 0x53a   :  { %v697_v1 = vmax.f32 %v689_v0, 0.0 }
 0x53c   :  { %3164 = vmatprep.mubr.f32.mxu0 %v697_v1 }
 0x53d   :  { %3165 = vmatmul.mubr.f32.vlgmr.msra.gmra.mrb[6].mxu0 %v698_v2 }
 0x610   :  { %v3166_v6 = vpop.f32.mrb[6].mxu0 }
 0x611   :  { %v775_v7 = vadd.f32 %v3166_v6, %v702_v4  ;;  %v769_v11 = vpop.f32.mrb[7].mxu0 }
 0x612   :  { %v770_v12 = vadd.f32 %v769_v11, %v702_v4 }
 0x613   :  { %v779_v14 = vadd.f32 %v775_v7, %v617_v56 }
 0x614   :  { %v778_v15 = vadd.f32 %v770_v12, %v616_v55 }
 0x615   :  { %782 = vadd.xlane.f32.xlu1 %v779_v14 }
 0x616   :  { %780 = vadd.xlane.f32.xlu0 %v778_v15 }
 0x6a2   :  { %v783_v16 = vpop.xlane.xlu1 %782 }
 0x6a3   :  { %v785_v17 = vmul.f32 0.0078125, %v783_v16  ;;  %v781_v18 = vpop.xlane.xlu0 %780 }
 0x6a4   :  { %v784_v20 = vmul.f32 0.0078125, %v781_v18 }
 0x6a5   :  { %v787_v21 = vsub.f32 %v779_v14, %v785_v17 }
 0x6a6   :  { %v786_v22 = vsub.f32 %v778_v15, %v784_v20 }
 0x6a7   :  { %v789_v23 = vmul.f32 %v787_v21, %v787_v21 }
 0x6a8   :  { %v788_v33 = vmul.f32 %v786_v22, %v786_v22 }
 0x6a9   :  { %792 = vadd.xlane.f32.xlu1 %v789_v23 }
 0x6aa   :  { %790 = vadd.xlane.f32.xlu0 %v788_v33 }
 0x736   :  { %v793_v60 = vpop.xlane.xlu1 %792 }
 0x737   :  { %v795_v24 = vmul.f32 0.0078125, %v793_v60  ;;  %v791_v34 = vpop.xlane.xlu0 %790 }
 0x738   :  { %v794_v25 = vmul.f32 0.0078125, %v791_v34 }
 0x739   :  { %v797_v26 = vadd.f32 1e-05, %v795_v24 }
 0x73a   :  { %v796_v27 = vadd.f32 1e-05, %v794_v25 }
 0x73b   :  { %4095 = vrsqrt.f32 %v797_v26 }
 0x73c   :  { %4097 = vrsqrt.f32 %v796_v27 }
 0x745   :  { %v4096_v28 = vpop.eup %4095 }
 0x746   :  { %v4098_v29 = vpop.eup %4097  ;;  %v801_v30 = vmul.f32 %v4096_v28, %v787_v21 }
 0x747   :  { %v800_v31 = vmul.f32 %v4098_v29, %v786_v22 }
 0x748   :  { %v803_v32 = vmul.f32 %v801_v30, %v609_v47 }
 0x749   :  { %v802_v36 = vmul.f32 %v800_v31, %v609_v47 }
 0x74a   :  { %v4336_v37 = vadd.f32 %v803_v32, %v615_v52 }
 0x74b   :  { %v4338_v38 = vadd.f32 %v802_v36, %v615_v52 }
 0x74c   :  { %4163 = dma.done.wait [#allocation3 + $0x1], 6144 }
 0x74d   :  { %4164 = vsyncadd [#allocation3 + $0x1], 4294961152  ;;  %1052 = vmatprep.mubr.f32.mxu1 %v4185_v35  ;;  %3199 = vmatprep.mubr.f32.mxu0 %v4338_v38  ;;  %v845_v39 = vld [vmem:[#allocation2 + $0x188] sm:$0xff]  ;;  %v844_v40 = vld [vmem:[#allocation2 + $0x180] sm:$0xff] }
 0x74e   :  { %v848_v41 = vld [vmem:[#allocation2 + $0x1b8] sm:$0xff]  ;;  %3608 = vmatprep.subr.bf16.mxu1 %v845_v39  ;;  %v847_v42 = vld [vmem:[#allocation2 + $0x1b0] sm:$0xff]  ;;  %v851_v43 = vld [vmem:[#allocation2 + $0x1e8] sm:$0xff] }
 0x74f   :  { %3610 = vmatpush1.bf16.msra.mxu1 %v844_v40  ;;  %v846_v44 = vld [vmem:[#allocation2 + $0x190] sm:$0xff]  ;;  %v849_v47 = vld [vmem:[#allocation2 + $0x1c0] sm:$0xff]  ;;  %v854_v49 = vld [vmem:[#allocation2 + $0x218] sm:$0xff] }
 0x750   :  { %3612 = vmatprep.subr.bf16.mxu1 %v848_v41  ;;  %3640 = vmatprep.subr.bf16.mxu0 %v846_v44  ;;  %v850_v48 = vld [vmem:[#allocation2 + $0x1e0] sm:$0xff]  ;;  %v852_v50 = vld [vmem:[#allocation2 + $0x1f0] sm:$0xff]  ;;  %v857_v52 = vld [vmem:[#allocation2 + $0x248] sm:$0xff] }
 0x751   :  { %3642 = vmatpush3.bf16.msra.mxu0 %v846_v44  ;;  %v853_v51 = vld [vmem:[#allocation2 + $0x210] sm:$0xff]  ;;  %v855_v53 = vld [vmem:[#allocation2 + $0x220] sm:$0xff]  ;;  %v860_v55 = vld [vmem:[#allocation2 + $0x278] sm:$0xff] }
 0x752   :  { %3644 = vmatprep.subr.bf16.mxu0 %v849_v47  ;;  %v856_v54 = vld [vmem:[#allocation2 + $0x240] sm:$0xff]  ;;  %v858_v56 = vld [vmem:[#allocation2 + $0x250] sm:$0xff]  ;;  %v863_v59 = vld [vmem:[#allocation2 + $0x2a8] sm:$0xff] }
 0x753   :  { %3614 = vmatpush1.bf16.msra.mxu1 %v847_v42  ;;  %v859_v57 = vld [vmem:[#allocation2 + $0x270] sm:$0xff]  ;;  %v861_v61 = vld [vmem:[#allocation2 + $0x280] sm:$0xff]  ;;  %v866_v63 = vld [vmem:[#allocation2 + $0x2d8] sm:$0xff] }
 0x754   :  { %3616 = vmatprep.subr.bf16.mxu1 %v851_v43  ;;  %v862_v62 = vld [vmem:[#allocation2 + $0x2a0] sm:$0xff]  ;;  %v864_v0 = vld [vmem:[#allocation2 + $0x2b0] sm:$0xff]  ;;  %v4349_v4 = vld [vmem:[%s4835_s0 + $0x18] sm:$0xff] }
 0x755   :  { %3646 = vmatpush3.bf16.msra.mxu0 %v849_v47  ;;  %v865_v1 = vld [vmem:[#allocation2 + $0x2d0] sm:$0xff]  ;;  %v867_v2 = vld [vmem:[#allocation2 + $0x2e0] sm:$0xff]  ;;  %v1143_v6 = vrot.slane %v4349_v4, %v4263_v10  ;;  %v1149_v7 = vrot.slane %v4349_v4, %v4260_v9  ;;  %v916_v60 = vld [vmem:[#allocation2 + $0x198] sm:$0xff] }
 0x756   :  { %3648 = vmatprep.subr.bf16.mxu0 %v852_v50  ;;  %v917_v24 = vld [vmem:[#allocation2 + $0x1c8] sm:$0xff]  ;;  %v918_v34 = vld [vmem:[#allocation2 + $0x1f8] sm:$0xff] }
 0x757   :  { %3618 = vmatpush1.bf16.msra.mxu1 %v850_v48  ;;  %v919_v25 = vld [vmem:[#allocation2 + $0x228] sm:$0xff]  ;;  %v920_v26 = vld [vmem:[#allocation2 + $0x258] sm:$0xff] }
 0x758   :  { %3620 = vmatprep.subr.bf16.mxu1 %v854_v49  ;;  %v921_v28 = vld [vmem:[#allocation2 + $0x288] sm:$0xff]  ;;  %v922_v30 = vld [vmem:[#allocation2 + $0x2b8] sm:$0xff] }
 0x759   :  { %3650 = vmatpush3.bf16.msra.mxu0 %v852_v50  ;;  %v923_v31 = vld [vmem:[#allocation2 + $0x2e8] sm:$0xff] }
 0x75a   :  { %3652 = vmatprep.subr.bf16.mxu0 %v855_v53 }
 0x75b   :  { %3622 = vmatpush1.bf16.msra.mxu1 %v853_v51 }
 0x75c   :  { %3624 = vmatprep.subr.bf16.mxu1 %v857_v52 }
 0x75d   :  { %3654 = vmatpush3.bf16.msra.mxu0 %v855_v53 }
 0x75e   :  { %3656 = vmatprep.subr.bf16.mxu0 %v858_v56 }
 0x75f   :  { %3626 = vmatpush1.bf16.msra.mxu1 %v856_v54 }
 0x760   :  { %3628 = vmatprep.subr.bf16.mxu1 %v860_v55 }
 0x761   :  { %3658 = vmatpush3.bf16.msra.mxu0 %v858_v56 }
 0x762   :  { %3660 = vmatprep.subr.bf16.mxu0 %v861_v61 }
 0x763   :  { %3630 = vmatpush1.bf16.msra.mxu1 %v859_v57 }
 0x764   :  { %3632 = vmatprep.subr.bf16.mxu1 %v863_v59 }
 0x765   :  { %3662 = vmatpush3.bf16.msra.mxu0 %v861_v61  ;;  %v1155_v61 = vrot.slane %v4349_v4, %v4266_v13 }
 0x766   :  { %3664 = vmatprep.subr.bf16.mxu0 %v864_v0 }
 0x767   :  { %3634 = vmatpush1.bf16.msra.mxu1 %v862_v62 }
 0x768   :  { %3636 = vmatprep.subr.bf16.mxu1 %v866_v63 }
 0x769   :  { %3666 = vmatpush3.bf16.msra.mxu0 %v864_v0 }
 0x76a   :  { %3668 = vmatprep.subr.bf16.mxu0 %v867_v2 }
 0x76b   :  { %3638 = vmatpush1.bf16.msra.mxu1 %v865_v1 }
 0x76c   :  { %3672 = vmatprep.subr.bf16.mxu1 %v916_v60 }
 0x76d   :  { %3670 = vmatpush3.bf16.msra.mxu0 %v867_v2 }
 0x76e   :  { %1053 = vmatmul.mubr.f32.vlgmr.msra.gmra.mrb[4].mxu1 %v4338_v38 }
 0x76f   :  { %1058 = vmatprep.mubr.f32.mxu1 %v4185_v35  ;;  %3674 = vmatpush3.bf16.msra.mxu1 %v916_v60 }
 0x770   :  { %3200 = vmatmul.mubr.f32.vlgmr.msra.gmra.mrb[8].mxu0 %v4336_v37  ;;  %3676 = vmatprep.subr.bf16.mxu1 %v917_v24 }
 0x772   :  { %1059 = vmatmul.mubr.f32.gmra.mrb[6].mxu1 %v4336_v37 }
 0x773   :  { %3678 = vmatpush3.bf16.msra.mxu1 %v917_v24 }
 0x774   :  { %3680 = vmatprep.subr.bf16.mxu1 %v918_v34 }
 0x777   :  { %3682 = vmatpush3.bf16.msra.mxu1 %v918_v34  ;;  %v940_v34 = vld [vmem:[#allocation2 + $0x1a0] sm:$0xff] }
 0x778   :  { %3684 = vmatprep.subr.bf16.mxu1 %v919_v25  ;;  %3704 = vmatprep.subr.bf16.mxu0 %v940_v34 }
 0x779   :  { %3706 = vmatpush3.bf16.msra.mxu0 %v940_v34 }
 0x77b   :  { %3686 = vmatpush3.bf16.msra.mxu1 %v919_v25  ;;  %v941_v25 = vld [vmem:[#allocation2 + $0x1d0] sm:$0xff] }
 0x77c   :  { %3688 = vmatprep.subr.bf16.mxu1 %v920_v26  ;;  %3708 = vmatprep.subr.bf16.mxu0 %v941_v25 }
 0x77d   :  { %3710 = vmatpush3.bf16.msra.mxu0 %v941_v25 }
 0x77f   :  { %3690 = vmatpush3.bf16.msra.mxu1 %v920_v26  ;;  %v942_v26 = vld [vmem:[#allocation2 + $0x200] sm:$0xff] }
 0x780   :  { %3692 = vmatprep.subr.bf16.mxu1 %v921_v28  ;;  %3712 = vmatprep.subr.bf16.mxu0 %v942_v26 }
 0x781   :  { %3714 = vmatpush3.bf16.msra.mxu0 %v942_v26 }
 0x783   :  { %3694 = vmatpush3.bf16.msra.mxu1 %v921_v28 }
 0x784   :  { %3696 = vmatprep.subr.bf16.mxu1 %v922_v30 }
 0x787   :  { %3698 = vmatpush3.bf16.msra.mxu1 %v922_v30 }
 0x788   :  { %3700 = vmatprep.subr.bf16.mxu1 %v923_v31 }
 0x78b   :  { %3702 = vmatpush3.bf16.msra.mxu1 %v923_v31 }
 0x841   :  { %v1054_v11 = vpop.f32.mrb[4].mxu1 }
 0x842   :  { %v1144_v12 = vadd.f32 %v1143_v6, %v1054_v11  ;;  %v1056_v14 = vpop.f32.mrb[5].mxu1 }
 0x843   :  { %v1150_v15 = vadd.f32 %v1149_v7, %v1056_v14  ;;  %v3201_v27 = vpop.f32.mrb[8].mxu0 }
 0x844   :  { %v1131_v29 = vpop.f32.mrb[9].mxu0  ;;  %v1157_v62 = vadd.f32 %v3201_v27, %v1155_v61 }
 0x845   :  { %v1060_v16 = vpop.f32.mrb[6].mxu1  ;;  %v1158_v17 = vmul.f32 %v1150_v15, %v1144_v12  ;;  %v1156_v63 = vadd.f32 %v1155_v61, %v1131_v29 }
 0x846   :  { %v1145_v18 = vadd.f32 %v1143_v6, %v1060_v16  ;;  %v1062_v20 = vpop.f32.mrb[7].mxu1 }
 0x847   :  { %v1151_v21 = vadd.f32 %v1149_v7, %v1062_v20  ;;  %1160 = vadd.xlane.f32.xlu0 %v1158_v17  ;;  %v1201_v20 = vrot.slane %v4349_v4, %v4272_v19 }
 0x848   :  { %v1165_v22 = vmul.f32 %v1150_v15, %v1145_v18 }
 0x849   :  { %v1159_v23 = vmul.f32 %v1151_v21, %v1145_v18  ;;  %v1164_v33 = vmul.f32 %v1151_v21, %v1144_v12 }
 0x84b   :  { %1162 = vadd.xlane.f32.xlu1 %v1159_v23  ;;  %1166 = vadd.xlane.f32.xlu0 %v1164_v33 }
 0x84f   :  { %1168 = vadd.xlane.f32.xlu1 %v1165_v22 }
 0x8d4   :  { %v1161_v32 = vpop.xlane.xlu0 %1160 }
 0x8d8   :  { %v1163_v36 = vpop.xlane.xlu1 %1162  ;;  %v1167_v39 = vpop.xlane.xlu0 %1166 }
 0x8d9   :  { %v1170_v40 = vmax.f32 %v1161_v32, %v1167_v39 }
 0x8db   :  { %v1172_v41 = vsub.f32 %v1161_v32, %v1170_v40  ;;  %v1178_v42 = vsub.f32 %v1167_v39, %v1170_v40  ;;  %v944_v39 = vld [vmem:[#allocation2 + $0x260] sm:$0xff]  ;;  %v945_v40 = vld [vmem:[#allocation2 + $0x290] sm:$0xff] }
 0x8dc   :  { %v1169_v43 = vpop.xlane.xlu1 %1168 }
 0x8dd   :  { %v1174_v44 = vmul.f32 1.442695, %v1172_v41  ;;  %v1180_v47 = vmul.f32 1.442695, %v1178_v42  ;;  %v1171_v48 = vmax.f32 %v1163_v36, %v1169_v43  ;;  %v946_v41 = vld [vmem:[#allocation2 + $0x2c0] sm:$0xff]  ;;  %v947_v42 = vld [vmem:[#allocation2 + $0x2f0] sm:$0xff] }
 0x8df   :  { %4099 = vpow2.f32 %v1174_v44  ;;  %v1173_v49 = vsub.f32 %v1163_v36, %v1171_v48  ;;  %v1179_v50 = vsub.f32 %v1169_v43, %v1171_v48  ;;  %v964_v43 = vld [vmem:[#allocation2 + $0x1a8] sm:$0xff]  ;;  %v965_v44 = vld [vmem:[#allocation2 + $0x1d8] sm:$0xff] }
 0x8e0   :  { %4101 = vpow2.f32 %v1180_v47  ;;  %3736 = vmatprep.subr.bf16.mxu1 %v964_v43  ;;  %v966_v47 = vld [vmem:[#allocation2 + $0x208] sm:$0xff]  ;;  %v967_v48 = vld [vmem:[#allocation2 + $0x238] sm:$0xff] }
 0x8e1   :  { %v1176_v51 = vmul.f32 1.442695, %v1173_v49  ;;  %v1182_v52 = vmul.f32 1.442695, %v1179_v50  ;;  %v968_v49 = vld [vmem:[#allocation2 + $0x268] sm:$0xff]  ;;  %v969_v50 = vld [vmem:[#allocation2 + $0x298] sm:$0xff] }
 0x8e3   :  { %4103 = vpow2.f32 %v1176_v51  ;;  %v970_v51 = vld [vmem:[#allocation2 + $0x2c8] sm:$0xff] }
 0x8e4   :  { %4105 = vpow2.f32 %v1182_v52 }
 0x8e9   :  { %v4100_v53 = vpop.eup %4099 }
 0x8ea   :  { %v4102_v54 = vpop.eup %4101 }
 0x8eb   :  { %v1184_v55 = vadd.f32 %v4102_v54, %v4100_v53 }
 0x8ed   :  { %v4104_v56 = vpop.eup %4103  ;;  %4107 = vrcp.f32 %v1184_v55 }
 0x8ee   :  { %v4106_v57 = vpop.eup %4105 }
 0x8ef   :  { %v1185_v59 = vadd.f32 %v4106_v57, %v4104_v56 }
 0x8f1   :  { %4109 = vrcp.f32 %v1185_v59  ;;  %v1304_v59 = vrot.slane %v4349_v4, %v4310_v45 }
 0x8f7   :  { %v4108_v0 = vpop.eup %4107 }
 0x8f8   :  { %v1192_v1 = vmul.f32 %v4108_v0, %v4102_v54  ;;  %v1188_v2 = vmul.f32 %v4108_v0, %v4100_v53 }
 0x8fa   :  { %v1194_v6 = vmul.f32 %v1192_v1, %v1157_v62  ;;  %v1190_v7 = vmul.f32 %v1188_v2, %v1156_v63  ;;  %v1310_v1 = vrot.slane %v4349_v4, %v4313_v46 }
 0x8fb   :  { %v4110_v11 = vpop.eup %4109 }
 0x8fc   :  { %v1189_v12 = vmul.f32 %v4110_v11, %v4104_v56  ;;  %v1193_v14 = vmul.f32 %v4110_v11, %v4106_v57  ;;  %v1196_v15 = vadd.f32 %v1194_v6, %v1190_v7 }
 0x8fe   :  { %v1191_v16 = vmul.f32 %v1189_v12, %v1157_v62  ;;  %v1195_v17 = vmul.f32 %v1193_v14, %v1156_v63  ;;  %3234 = vmatprep.mubr.f32.mxu1 %v1196_v15  ;;  %v971_v12 = vld [vmem:[#allocation2 + $0x2f8] sm:$0xff]  ;;  %v1316_v14 = vrot.slane %v4349_v4, %v4320_v58 }
 0x900   :  { %v1197_v18 = vadd.f32 %v1195_v17, %v1191_v16 }
 0x902   :  { %3235 = vmatmul.mubr.f32.vlgmr.msra.gmra.mrb[8].mxu1 %v1197_v18 }
 0x903   :  { %3738 = vmatpush3.bf16.msra.mxu1 %v964_v43 }
 0x904   :  { %3740 = vmatprep.subr.bf16.mxu1 %v965_v44 }
 0x907   :  { %3742 = vmatpush3.bf16.msra.mxu1 %v965_v44 }
 0x908   :  { %3744 = vmatprep.subr.bf16.mxu1 %v966_v47 }
 0x90b   :  { %3746 = vmatpush3.bf16.msra.mxu1 %v966_v47 }
 0x90c   :  { %3748 = vmatprep.subr.bf16.mxu1 %v967_v48 }
 0x90f   :  { %3750 = vmatpush3.bf16.msra.mxu1 %v967_v48 }
 0x910   :  { %3752 = vmatprep.subr.bf16.mxu1 %v968_v49 }
 0x913   :  { %3754 = vmatpush3.bf16.msra.mxu1 %v968_v49 }
 0x914   :  { %3756 = vmatprep.subr.bf16.mxu1 %v969_v50 }
 0x917   :  { %3758 = vmatpush3.bf16.msra.mxu1 %v969_v50 }
 0x918   :  { %3760 = vmatprep.subr.bf16.mxu1 %v970_v51 }
 0x91b   :  { %3762 = vmatpush3.bf16.msra.mxu1 %v970_v51 }
 0x91c   :  { %3764 = vmatprep.subr.bf16.mxu1 %v971_v12 }
 0x91f   :  { %3766 = vmatpush3.bf16.msra.mxu1 %v971_v12 }
 0x9d5   :  { %v3236_v21 = vpop.f32.mrb[8].mxu1 }
 0x9d6   :  { %v1274_v22 = vadd.f32 %v3236_v21, %v1201_v20  ;;  %v1268_v23 = vpop.f32.mrb[9].mxu1 }
 0x9d7   :  { %v1269_v33 = vadd.f32 %v1268_v23, %v1201_v20 }
 0x9d8   :  { %v1278_v60 = vadd.f32 %v1274_v22, %v4336_v37  ;;  %v1397_v22 = vrot.slane %v4349_v4, %v4325_v3 }
 0x9d9   :  { %v1277_v24 = vadd.f32 %v1269_v33, %v4338_v38  ;;  %v943_v38 = vld [vmem:[#allocation2 + $0x230] sm:$0xff] }
 0x9da   :  { %1281 = vadd.xlane.f32.xlu1 %v1278_v60  ;;  %3716 = vmatprep.subr.bf16.mxu0 %v943_v38 }
 0x9db   :  { %1279 = vadd.xlane.f32.xlu0 %v1277_v24  ;;  %3718 = vmatpush3.bf16.msra.mxu0 %v943_v38 }
 0x9dc   :  { %3720 = vmatprep.subr.bf16.mxu0 %v944_v39 }
 0x9df   :  { %3722 = vmatpush3.bf16.msra.mxu0 %v944_v39 }
 0x9e0   :  { %3724 = vmatprep.subr.bf16.mxu0 %v945_v40 }
 0x9e3   :  { %3726 = vmatpush3.bf16.msra.mxu0 %v945_v40 }
 0x9e4   :  { %3728 = vmatprep.subr.bf16.mxu0 %v946_v41 }
 0x9e7   :  { %3730 = vmatpush3.bf16.msra.mxu0 %v946_v41 }
 0x9e8   :  { %3732 = vmatprep.subr.bf16.mxu0 %v947_v42 }
 0x9eb   :  { %3734 = vmatpush3.bf16.msra.mxu0 %v947_v42 }
 0xa67   :  { %v1282_v27 = vpop.xlane.xlu1 %1281 }
 0xa68   :  { %v1284_v28 = vmul.f32 0.0078125, %v1282_v27  ;;  %v1280_v29 = vpop.xlane.xlu0 %1279 }
 0xa69   :  { %v1283_v30 = vmul.f32 0.0078125, %v1280_v29 }
 0xa6a   :  { %v1286_v31 = vsub.f32 %v1278_v60, %v1284_v28 }
 0xa6b   :  { %v1285_v32 = vsub.f32 %v1277_v24, %v1283_v30 }
 0xa6c   :  { %v1288_v37 = vmul.f32 %v1286_v31, %v1286_v31 }
 0xa6d   :  { %v1287_v36 = vmul.f32 %v1285_v32, %v1285_v32 }
 0xa6e   :  { %1291 = vadd.xlane.f32.xlu1 %v1288_v37 }
 0xa6f   :  { %1289 = vadd.xlane.f32.xlu0 %v1287_v36 }
 0xafb   :  { %v1292_v52 = vpop.xlane.xlu1 %1291 }
 0xafc   :  { %v1294_v53 = vmul.f32 0.0078125, %v1292_v52  ;;  %v1290_v54 = vpop.xlane.xlu0 %1289 }
 0xafd   :  { %v1293_v55 = vmul.f32 0.0078125, %v1290_v54 }
 0xafe   :  { %v1296_v56 = vadd.f32 1e-05, %v1294_v53 }
 0xaff   :  { %v1295_v57 = vadd.f32 1e-05, %v1293_v55 }
 0xb00   :  { %4111 = vrsqrt.f32 %v1296_v56 }
 0xb01   :  { %4113 = vrsqrt.f32 %v1295_v57 }
 0xb0a   :  { %v4112_v61 = vpop.eup %4111 }
 0xb0b   :  { %v4114_v62 = vpop.eup %4113  ;;  %v1300_v63 = vmul.f32 %v4112_v61, %v1286_v31 }
 0xb0c   :  { %v1299_v0 = vmul.f32 %v4114_v62, %v1285_v32 }
 0xb0d   :  { %v1306_v2 = vmul.f32 %v1304_v59, %v1300_v63 }
 0xb0e   :  { %v1305_v6 = vmul.f32 %v1304_v59, %v1299_v0 }
 0xb0f   :  { %v1312_v11 = vadd.f32 %v1310_v1, %v1306_v2 }
 0xb10   :  { %v1311_v7 = vadd.f32 %v1310_v1, %v1305_v6 }
 0xb12   :  { %3269 = vmatprep.mubr.f32.mxu0 %v1311_v7 }
 0xb13   :  { %3270 = vmatmul.mubr.f32.vlgmr.msra.gmra.mrb[10].mxu0 %v1312_v11 }
 0xbe6   :  { %v3271_v15 = vpop.f32.mrb[10].mxu0 }
 0xbe7   :  { %v1389_v16 = vadd.f32 %v3271_v15, %v1316_v14  ;;  %v1383_v17 = vpop.f32.mrb[11].mxu0 }
 0xbe8   :  { %v1384_v18 = vadd.f32 %v1383_v17, %v1316_v14 }
 0xbe9   :  { %v1393_v21 = vmax.f32 %v1389_v16, 0.0 }
 0xbea   :  { %v1392_v20 = vmax.f32 %v1384_v18, 0.0 }
 0xbec   :  { %3304 = vmatprep.mubr.f32.mxu1 %v1392_v20 }
 0xbed   :  { %3305 = vmatmul.mubr.f32.vlgmr.msra.gmra.mrb[10].mxu1 %v1393_v21 }
 0xcc0   :  { %v3306_v23 = vpop.f32.mrb[10].mxu1 }
 0xcc1   :  { %v1470_v33 = vadd.f32 %v3306_v23, %v1397_v22  ;;  %v1464_v60 = vpop.f32.mrb[11].mxu1 }
 0xcc2   :  { %v1465_v24 = vadd.f32 %v1464_v60, %v1397_v22 }
 0xcc3   :  { %v1474_v34 = vadd.f32 %v1470_v33, %v1312_v11 }
 0xcc4   :  { %v1473_v25 = vadd.f32 %v1465_v24, %v1311_v7 }
 0xcc5   :  { %1477 = vadd.xlane.f32.xlu1 %v1474_v34 }
 0xcc6   :  { %1475 = vadd.xlane.f32.xlu0 %v1473_v25 }
 0xd52   :  { %v1478_v26 = vpop.xlane.xlu1 %1477 }
 0xd53   :  { %v1480_v27 = vmul.f32 0.0078125, %v1478_v26  ;;  %v1476_v28 = vpop.xlane.xlu0 %1475 }
 0xd54   :  { %v1479_v29 = vmul.f32 0.0078125, %v1476_v28 }
 0xd55   :  { %v1482_v30 = vsub.f32 %v1474_v34, %v1480_v27 }
 0xd56   :  { %v1481_v31 = vsub.f32 %v1473_v25, %v1479_v29 }
 0xd57   :  { %v1484_v32 = vmul.f32 %v1482_v30, %v1482_v30 }
 0xd58   :  { %v1483_v37 = vmul.f32 %v1481_v31, %v1481_v31 }
 0xd59   :  { %1487 = vadd.xlane.f32.xlu1 %v1484_v32 }
 0xd5a   :  { %1485 = vadd.xlane.f32.xlu0 %v1483_v37 }
 0xde6   :  { %v1488_v36 = vpop.xlane.xlu1 %1487 }
 0xde7   :  { %v1490_v4 = vmul.f32 0.0078125, %v1488_v36  ;;  %v1486_v38 = vpop.xlane.xlu0 %1485 }
 0xde8   :  { %v1489_v39 = vmul.f32 0.0078125, %v1486_v38 }
 0xde9   :  { %v1492_v40 = vadd.f32 1e-05, %v1490_v4 }
 0xdea   :  { %v1491_v41 = vadd.f32 1e-05, %v1489_v39 }
 0xdeb   :  { %4115 = vrsqrt.f32 %v1492_v40 }
 0xdec   :  { %4117 = vrsqrt.f32 %v1491_v41 }
 0xdf5   :  { %v4116_v42 = vpop.eup %4115 }
 0xdf6   :  { %v4118_v43 = vpop.eup %4117  ;;  %v1496_v44 = vmul.f32 %v4116_v42, %v1482_v30 }
 0xdf7   :  { %v1495_v47 = vmul.f32 %v4118_v43, %v1481_v31 }
 0xdf8   :  { %v1498_v48 = vmul.f32 %v1496_v44, %v1304_v59 }
 0xdf9   :  { %v1497_v49 = vmul.f32 %v1495_v47, %v1304_v59 }
 0xdfa   :  { %v4369_v50 = vadd.f32 %v1498_v48, %v1310_v1 }
 0xdfb   :  { %v4371_v51 = vadd.f32 %v1497_v49, %v1310_v1 }
 0xdfc   :  { %4165 = dma.done.wait [#allocation3], 6144 }
 0xdfd   :  { %4166 = vsyncadd [#allocation3], 4294961152  ;;  %1712 = vmatprep.mubr.f32.mxu0 %v4185_v35  ;;  %3339 = vmatprep.mubr.f32.mxu1 %v4371_v51  ;;  %v1505_v52 = vld [vmem:[#allocation2 + $0x8] sm:$0xff]  ;;  %v1504_v53 = vld [vmem:[#allocation2] sm:$0xff]  ;;  %vm2633_vm0 = vcmask 9216  }
 0xdfe   :  { %v1508_v54 = vld [vmem:[#allocation2 + $0x38] sm:$0xff]  ;;  %3768 = vmatprep.subr.bf16.mxu0 %v1505_v52  ;;  %v1507_v55 = vld [vmem:[#allocation2 + $0x30] sm:$0xff]  ;;  %v1511_v56 = vld [vmem:[#allocation2 + $0x68] sm:$0xff] }
 0xdff   :  { %3770 = vmatpush1.bf16.msra.mxu0 %v1504_v53  ;;  %v1506_v57 = vld [vmem:[#allocation2 + $0x10] sm:$0xff]  ;;  %v1509_v59 = vld [vmem:[#allocation2 + $0x40] sm:$0xff]  ;;  %v1514_v62 = vld [vmem:[#allocation2 + $0x98] sm:$0xff] }
 0xe00   :  { %3772 = vmatprep.subr.bf16.mxu0 %v1508_v54  ;;  %3800 = vmatprep.subr.bf16.mxu1 %v1506_v57  ;;  %v1510_v61 = vld [vmem:[#allocation2 + $0x60] sm:$0xff]  ;;  %v1512_v63 = vld [vmem:[#allocation2 + $0x70] sm:$0xff]  ;;  %v1517_v1 = vld [vmem:[#allocation2 + $0xc8] sm:$0xff] }
 0xe01   :  { %3802 = vmatpush3.bf16.msra.mxu1 %v1506_v57  ;;  %v1513_v0 = vld [vmem:[#allocation2 + $0x90] sm:$0xff]  ;;  %v1515_v2 = vld [vmem:[#allocation2 + $0xa0] sm:$0xff]  ;;  %v1520_v7 = vld [vmem:[#allocation2 + $0xf8] sm:$0xff] }
 0xe02   :  { %3804 = vmatprep.subr.bf16.mxu1 %v1509_v59  ;;  %v1516_v6 = vld [vmem:[#allocation2 + $0xc0] sm:$0xff]  ;;  %v1518_v11 = vld [vmem:[#allocation2 + $0xd0] sm:$0xff]  ;;  %v1523_v14 = vld [vmem:[#allocation2 + $0x128] sm:$0xff] }
 0xe03   :  { %3774 = vmatpush1.bf16.msra.mxu0 %v1507_v55  ;;  %v1519_v12 = vld [vmem:[#allocation2 + $0xf0] sm:$0xff]  ;;  %v1521_v15 = vld [vmem:[#allocation2 + $0x100] sm:$0xff]  ;;  %v1526_v17 = vld [vmem:[#allocation2 + $0x158] sm:$0xff] }
 0xe04   :  { %3776 = vmatprep.subr.bf16.mxu0 %v1511_v56  ;;  %v1522_v16 = vld [vmem:[#allocation2 + $0x120] sm:$0xff]  ;;  %v1524_v18 = vld [vmem:[#allocation2 + $0x130] sm:$0xff]  ;;  %v1578_v37 = vld [vmem:[#allocation2 + $0x78] sm:$0xff] }
 0xe05   :  { %3806 = vmatpush3.bf16.msra.mxu1 %v1509_v59  ;;  %v1525_v20 = vld [vmem:[#allocation2 + $0x150] sm:$0xff]  ;;  %v1527_v21 = vld [vmem:[#allocation2 + $0x160] sm:$0xff]  ;;  %v1579_v36 = vld [vmem:[#allocation2 + $0xa8] sm:$0xff] }
 0xe06   :  { %3808 = vmatprep.subr.bf16.mxu1 %v1512_v63  ;;  %v4382_v22 = vld [vmem:[%s4835_s0 + $0x20] sm:$0xff]  ;;  %v1580_v4 = vld [vmem:[#allocation2 + $0xd8] sm:$0xff]  ;;  %v1581_v39 = vld [vmem:[#allocation2 + $0x108] sm:$0xff] }
 0xe07   :  { %3778 = vmatpush1.bf16.msra.mxu0 %v1510_v61  ;;  %v1803_v23 = vrot.slane %v4382_v22, %v4263_v10  ;;  %v1809_v33 = vrot.slane %v4382_v22, %v4260_v9  ;;  %v1576_v10 = vld [vmem:[#allocation2 + $0x18] sm:$0xff]  ;;  %v1577_v9 = vld [vmem:[#allocation2 + $0x48] sm:$0xff] }
 0xe08   :  { %3780 = vmatprep.subr.bf16.mxu0 %v1514_v62  ;;  %v1582_v41 = vld [vmem:[#allocation2 + $0x138] sm:$0xff]  ;;  %v1583_v42 = vld [vmem:[#allocation2 + $0x168] sm:$0xff] }
 0xe09   :  { %3810 = vmatpush3.bf16.msra.mxu1 %v1512_v63 }
 0xe0a   :  { %3812 = vmatprep.subr.bf16.mxu1 %v1515_v2 }
 0xe0b   :  { %3782 = vmatpush1.bf16.msra.mxu0 %v1513_v0 }
 0xe0c   :  { %3784 = vmatprep.subr.bf16.mxu0 %v1517_v1 }
 0xe0d   :  { %3814 = vmatpush3.bf16.msra.mxu1 %v1515_v2 }
 0xe0e   :  { %3816 = vmatprep.subr.bf16.mxu1 %v1518_v11 }
 0xe0f   :  { %3786 = vmatpush1.bf16.msra.mxu0 %v1516_v6 }
 0xe10   :  { %3788 = vmatprep.subr.bf16.mxu0 %v1520_v7 }
 0xe11   :  { %3818 = vmatpush3.bf16.msra.mxu1 %v1518_v11  ;;  %v1815_v11 = vrot.slane %v4382_v22, %v4266_v13 }
 0xe12   :  { %3820 = vmatprep.subr.bf16.mxu1 %v1521_v15 }
 0xe13   :  { %3790 = vmatpush1.bf16.msra.mxu0 %v1519_v12 }
 0xe14   :  { %3792 = vmatprep.subr.bf16.mxu0 %v1523_v14 }
 0xe15   :  { %3822 = vmatpush3.bf16.msra.mxu1 %v1521_v15 }
 0xe16   :  { %3824 = vmatprep.subr.bf16.mxu1 %v1524_v18 }
 0xe17   :  { %3794 = vmatpush1.bf16.msra.mxu0 %v1522_v16 }
 0xe18   :  { %3796 = vmatprep.subr.bf16.mxu0 %v1526_v17 }
 0xe19   :  { %3826 = vmatpush3.bf16.msra.mxu1 %v1524_v18 }
 0xe1a   :  { %3828 = vmatprep.subr.bf16.mxu1 %v1527_v21 }
 0xe1b   :  { %3798 = vmatpush1.bf16.msra.mxu0 %v1525_v20 }
 0xe1c   :  { %3832 = vmatprep.subr.bf16.mxu0 %v1576_v10 }
 0xe1d   :  { %3830 = vmatpush3.bf16.msra.mxu1 %v1527_v21 }
 0xe1e   :  { %1713 = vmatmul.mubr.f32.vlgmr.msra.gmra.mrb[12].mxu0 %v4371_v51 }
 0xe1f   :  { %1718 = vmatprep.mubr.f32.mxu0 %v4185_v35  ;;  %3834 = vmatpush3.bf16.msra.mxu0 %v1576_v10  ;;  %v1602_v10 = vld [vmem:[#allocation2 + $0x80] sm:$0xff] }
 0xe20   :  { %3340 = vmatmul.mubr.f32.vlgmr.msra.gmra.mrb[12].mxu1 %v4369_v50  ;;  %3836 = vmatprep.subr.bf16.mxu0 %v1577_v9 }
 0xe22   :  { %1719 = vmatmul.mubr.f32.gmra.mrb[14].mxu0 %v4369_v50 }
 0xe23   :  { %3838 = vmatpush3.bf16.msra.mxu0 %v1577_v9 }
 0xe24   :  { %3840 = vmatprep.subr.bf16.mxu0 %v1578_v37 }
 0xe27   :  { %3842 = vmatpush3.bf16.msra.mxu0 %v1578_v37 }
 0xe28   :  { %3844 = vmatprep.subr.bf16.mxu0 %v1579_v36 }
 0xe2b   :  { %3846 = vmatpush3.bf16.msra.mxu0 %v1579_v36 }
 0xe2c   :  { %3848 = vmatprep.subr.bf16.mxu0 %v1580_v4 }
 0xe2f   :  { %3850 = vmatpush3.bf16.msra.mxu0 %v1580_v4 }
 0xe30   :  { %3852 = vmatprep.subr.bf16.mxu0 %v1581_v39 }
 0xe33   :  { %3854 = vmatpush3.bf16.msra.mxu0 %v1581_v39 }
 0xe34   :  { %3856 = vmatprep.subr.bf16.mxu0 %v1582_v41 }
 0xe37   :  { %3858 = vmatpush3.bf16.msra.mxu0 %v1582_v41  ;;  %v1605_v41 = vld [vmem:[#allocation2 + $0x110] sm:$0xff] }
 0xe38   :  { %3860 = vmatprep.subr.bf16.mxu0 %v1583_v42 }
 0xe3b   :  { %3862 = vmatpush3.bf16.msra.mxu0 %v1583_v42  ;;  %v1606_v42 = vld [vmem:[#allocation2 + $0x140] sm:$0xff] }
 0xef1   :  { %v1714_v60 = vpop.f32.mrb[12].mxu0 }
 0xef2   :  { %v1804_v24 = vadd.f32 %v1803_v23, %v1714_v60  ;;  %v1716_v34 = vpop.f32.mrb[13].mxu0 }
 0xef3   :  { %v1810_v35 = vadd.f32 %v1809_v33, %v1716_v34  ;;  %v3341_v38 = vpop.f32.mrb[12].mxu1 }
 0xef4   :  { %v1791_v40 = vpop.f32.mrb[13].mxu1  ;;  %v1817_v12 = vadd.f32 %v3341_v38, %v1815_v11 }
 0xef5   :  { %v1720_v25 = vpop.f32.mrb[14].mxu0  ;;  %v1818_v26 = vmul.f32 %v1810_v35, %v1804_v24  ;;  %v1816_v14 = vadd.f32 %v1815_v11, %v1791_v40  ;;  %v1604_v40 = vld [vmem:[#allocation2 + $0xe0] sm:$0xff] }
 0xef6   :  { %v1805_v27 = vadd.f32 %v1803_v23, %v1720_v25  ;;  %v1722_v28 = vpop.f32.mrb[15].mxu0  ;;  %v1861_v25 = vrot.slane %v4382_v22, %v4272_v19 }
 0xef7   :  { %v1811_v29 = vadd.f32 %v1809_v33, %v1722_v28  ;;  %1820 = vadd.xlane.f32.xlu0 %v1818_v26 }
 0xef8   :  { %v1825_v30 = vmul.f32 %v1810_v35, %v1805_v27 }
 0xef9   :  { %v1819_v31 = vmul.f32 %v1811_v29, %v1805_v27  ;;  %v1824_v32 = vmul.f32 %v1811_v29, %v1804_v24 }
 0xefb   :  { %1822 = vadd.xlane.f32.xlu1 %v1819_v31  ;;  %1826 = vadd.xlane.f32.xlu0 %v1824_v32  ;;  %v1600_v31 = vld [vmem:[#allocation2 + $0x20] sm:$0xff]  ;;  %v1601_v32 = vld [vmem:[#allocation2 + $0x50] sm:$0xff] }
 0xefc   :  { %3864 = vmatprep.subr.bf16.mxu1 %v1600_v31 }
 0xefd   :  { %3866 = vmatpush3.bf16.msra.mxu1 %v1600_v31 }
 0xefe   :  { %3868 = vmatprep.subr.bf16.mxu1 %v1601_v32 }
 0xeff   :  { %1828 = vadd.xlane.f32.xlu1 %v1825_v30 }
 0xf01   :  { %3870 = vmatpush3.bf16.msra.mxu1 %v1601_v32 }
 0xf02   :  { %3872 = vmatprep.subr.bf16.mxu1 %v1602_v10 }
 0xf05   :  { %3874 = vmatpush3.bf16.msra.mxu1 %v1602_v10 }
 0xf84   :  { %v1821_v43 = vpop.xlane.xlu0 %1820 }
 0xf88   :  { %v1823_v44 = vpop.xlane.xlu1 %1822  ;;  %v1827_v47 = vpop.xlane.xlu0 %1826 }
 0xf89   :  { %v1830_v48 = vmax.f32 %v1821_v43, %v1827_v47 }
 0xf8b   :  { %v1832_v49 = vsub.f32 %v1821_v43, %v1830_v48  ;;  %v1838_v52 = vsub.f32 %v1827_v47, %v1830_v48  ;;  %v1607_v43 = vld [vmem:[#allocation2 + $0x170] sm:$0xff]  ;;  %v1625_v47 = vld [vmem:[#allocation2 + $0x58] sm:$0xff]  ;;  %v1626_v48 = vld [vmem:[#allocation2 + $0x88] sm:$0xff] }
 0xf8c   :  { %v1829_v53 = vpop.xlane.xlu1 %1828 }
 0xf8d   :  { %v1834_v54 = vmul.f32 1.442695, %v1832_v49  ;;  %v1840_v55 = vmul.f32 1.442695, %v1838_v52  ;;  %v1831_v56 = vmax.f32 %v1823_v44, %v1829_v53  ;;  %v1627_v49 = vld [vmem:[#allocation2 + $0xb8] sm:$0xff]  ;;  %v1628_v52 = vld [vmem:[#allocation2 + $0xe8] sm:$0xff] }
 0xf8f   :  { %4119 = vpow2.f32 %v1834_v54  ;;  %v1833_v57 = vsub.f32 %v1823_v44, %v1831_v56  ;;  %v1839_v59 = vsub.f32 %v1829_v53, %v1831_v56  ;;  %v1624_v44 = vld [vmem:[#allocation2 + $0x28] sm:$0xff]  ;;  %v1629_v53 = vld [vmem:[#allocation2 + $0x118] sm:$0xff] }
 0xf90   :  { %4121 = vpow2.f32 %v1840_v55  ;;  %3896 = vmatprep.subr.bf16.mxu0 %v1624_v44  ;;  %v1630_v54 = vld [vmem:[#allocation2 + $0x148] sm:$0xff] }
 0xf91   :  { %v1836_v61 = vmul.f32 1.442695, %v1833_v57  ;;  %v1842_v62 = vmul.f32 1.442695, %v1839_v59 }
 0xf93   :  { %4123 = vpow2.f32 %v1836_v61 }
 0xf94   :  { %4125 = vpow2.f32 %v1842_v62 }
 0xf99   :  { %v4120_v63 = vpop.eup %4119 }
 0xf9a   :  { %v4122_v0 = vpop.eup %4121 }
 0xf9b   :  { %v1844_v1 = vadd.f32 %v4122_v0, %v4120_v63 }
 0xf9d   :  { %v4124_v2 = vpop.eup %4123  ;;  %4127 = vrcp.f32 %v1844_v1 }
 0xf9e   :  { %v4126_v6 = vpop.eup %4125 }
 0xf9f   :  { %v1845_v7 = vadd.f32 %v4126_v6, %v4124_v2 }
 0xfa1   :  { %4129 = vrcp.f32 %v1845_v7  ;;  %v4400_v7 = vrot.slane %v4382_v22, %v4313_v46 }
 0xfa7   :  { %v4128_v15 = vpop.eup %4127 }
 0xfa8   :  { %v1852_v16 = vmul.f32 %v4128_v15, %v4122_v0  ;;  %v1848_v17 = vmul.f32 %v4128_v15, %v4120_v63  ;;  %v4396_v63 = vrot.slane %v4382_v22, %v4310_v45  ;;  %v1631_v45 = vld [vmem:[#allocation2 + $0x178] sm:$0xff] }
 0xfaa   :  { %v1854_v18 = vmul.f32 %v1852_v16, %v1817_v12  ;;  %v1850_v20 = vmul.f32 %v1848_v17, %v1816_v14  ;;  %v1976_v16 = vrot.slane %v4382_v22, %v4320_v58  ;;  %v2177_v58 = vld [vmem:[%s4836_s1 + $0x80] sm:$0xff] }
 0xfab   :  { %v4130_v21 = vpop.eup %4129 }
 0xfac   :  { %v1849_v23 = vmul.f32 %v4130_v21, %v4124_v2  ;;  %v1853_v33 = vmul.f32 %v4130_v21, %v4126_v6  ;;  %v1856_v60 = vadd.f32 %v1854_v18, %v1850_v20 }
 0xfae   :  { %v1851_v24 = vmul.f32 %v1849_v23, %v1817_v12  ;;  %v1855_v34 = vmul.f32 %v1853_v33, %v1816_v14  ;;  %3374 = vmatprep.mubr.f32.mxu0 %v1856_v60  ;;  %v2057_v33 = vrot.slane %v4382_v22, %v4325_v3  ;;  %v2161_v3 = vld [vmem:[%s4836_s1] sm:$0xff] }
 0xfb0   :  { %v1857_v35 = vadd.f32 %v1855_v34, %v1851_v24 }
 0xfb2   :  { %3375 = vmatmul.mubr.f32.vlgmr.msra.gmra.mrb[16].mxu0 %v1857_v35 }
 0xfb3   :  { %3898 = vmatpush3.bf16.msra.mxu0 %v1624_v44  ;;  %v2164_v44 = vld [vmem:[%s4836_s1 + $0x18] sm:$0xff] }
 0xfb4   :  { %3900 = vmatprep.subr.bf16.mxu0 %v1625_v47 }
 0xfb7   :  { %3902 = vmatpush3.bf16.msra.mxu0 %v1625_v47 }
 0xfb8   :  { %3904 = vmatprep.subr.bf16.mxu0 %v1626_v48 }
 0xfbb   :  { %3906 = vmatpush3.bf16.msra.mxu0 %v1626_v48  ;;  %v2211_v48 = vld [vmem:[%s4836_s1 + $0x190] sm:$0xff] }
 0xfbc   :  { %3908 = vmatprep.subr.bf16.mxu0 %v1627_v49 }
 0xfbf   :  { %3910 = vmatpush3.bf16.msra.mxu0 %v1627_v49  ;;  %v2212_v49 = vld [vmem:[%s4836_s1 + $0x198] sm:$0xff] }
 0xfc0   :  { %3912 = vmatprep.subr.bf16.mxu0 %v1628_v52 }
 0xfc3   :  { %3914 = vmatpush3.bf16.msra.mxu0 %v1628_v52  ;;  %v3963_v52 = vpack.c.bf16 %v2212_v49, %v2211_v48 }
 0xfc4   :  { %3916 = vmatprep.subr.bf16.mxu0 %v1629_v53 }
 0xfc7   :  { %3918 = vmatpush3.bf16.msra.mxu0 %v1629_v53  ;;  %v2195_v53 = vld [vmem:[%s4836_s1 + $0x110] sm:$0xff] }
 0xfc8   :  { %3920 = vmatprep.subr.bf16.mxu0 %v1630_v54 }
 0xfcb   :  { %3922 = vmatpush3.bf16.msra.mxu0 %v1630_v54  ;;  %v2196_v54 = vld [vmem:[%s4836_s1 + $0x118] sm:$0xff] }
 0xfcc   :  { %3924 = vmatprep.subr.bf16.mxu0 %v1631_v45 }
 0xfcf   :  { %3926 = vmatpush3.bf16.msra.mxu0 %v1631_v45  ;;  %v2184_v45 = vld [vmem:[%s4836_s1 + $0xb8] sm:$0xff] }
0x1085   :  { %v3376_v13 = vpop.f32.mrb[16].mxu0 }
0x1086   :  { %v1934_v26 = vadd.f32 %v3376_v13, %v1861_v25  ;;  %v1928_v27 = vpop.f32.mrb[17].mxu0 }
0x1087   :  { %v1929_v28 = vadd.f32 %v1928_v27, %v1861_v25  ;;  %v2162_v27 = vld [vmem:[%s4836_s1 + $0x8] sm:$0xff] }
0x1088   :  { %v1938_v29 = vadd.f32 %v1934_v26, %v4369_v50  ;;  %v2178_v26 = vld [vmem:[%s4836_s1 + $0x88] sm:$0xff] }
0x1089   :  { %v1937_v30 = vadd.f32 %v1929_v28, %v4371_v51  ;;  %v1603_v51 = vld [vmem:[#allocation2 + $0xb0] sm:$0xff]  ;;  %v3927_v22 = vpack.c.bf16 %v2178_v26, %v2177_v58  ;;  %v3929_v28 = vpack.c.bf16 %v2162_v27, %v2161_v3  ;;  %v2170_v58 = vld [vmem:[%s4836_s1 + $0x48] sm:$0xff]  ;;  %v2217_v3 = vld [vmem:[%s4836_s1 + $0x1c0] sm:$0xff] }
0x108a   :  { %1941 = vadd.xlane.f32.xlu1 %v1938_v29  ;;  %3876 = vmatprep.subr.bf16.mxu1 %v1603_v51 }
0x108b   :  { %1939 = vadd.xlane.f32.xlu0 %v1937_v30  ;;  %3878 = vmatpush3.bf16.msra.mxu1 %v1603_v51 }
0x108c   :  { %3880 = vmatprep.subr.bf16.mxu1 %v1604_v40 }
0x108f   :  { %3882 = vmatpush3.bf16.msra.mxu1 %v1604_v40  ;;  %v2179_v40 = vld [vmem:[%s4836_s1 + $0x90] sm:$0xff] }
0x1090   :  { %3884 = vmatprep.subr.bf16.mxu1 %v1605_v41 }
0x1093   :  { %3886 = vmatpush3.bf16.msra.mxu1 %v1605_v41  ;;  %v2180_v41 = vld [vmem:[%s4836_s1 + $0x98] sm:$0xff] }
0x1094   :  { %3888 = vmatprep.subr.bf16.mxu1 %v1606_v42 }
0x1097   :  { %3890 = vmatpush3.bf16.msra.mxu1 %v1606_v42  ;;  %v3931_v42 = vpack.c.bf16 %v2180_v41, %v2179_v40  ;;  %v2204_v40 = vld [vmem:[%s4836_s1 + $0x158] sm:$0xff]  ;;  %v2189_v41 = vld [vmem:[%s4836_s1 + $0xe0] sm:$0xff] }
0x1098   :  { %3892 = vmatprep.subr.bf16.mxu1 %v1607_v43 }
0x109b   :  { %3894 = vmatpush3.bf16.msra.mxu1 %v1607_v43  ;;  %v2163_v43 = vld [vmem:[%s4836_s1 + $0x10] sm:$0xff] }
0x109c   :  { %3928 = vmatprep.subr.bf16.mxu1 %v3927_v22  ;;  %v3933_v47 = vpack.c.bf16 %v2164_v44, %v2163_v43  ;;  %v2218_v22 = vld [vmem:[%s4836_s1 + $0x1c8] sm:$0xff]  ;;  %v2173_v44 = vld [vmem:[%s4836_s1 + $0x60] sm:$0xff] }
0x109d   :  { %v3975_v27 = vpack.c.bf16 %v2218_v22, %v2217_v3  ;;  %v2190_v43 = vld [vmem:[%s4836_s1 + $0xe8] sm:$0xff] }
0x109e   :  { %v3951_v48 = vpack.c.bf16 %v2190_v43, %v2189_v41  ;;  %v2276_v43 = vld [vmem:[%s4836_s1 + $0x398] sm:$0xff] }
0x1117   :  { %v1942_v19 = vpop.xlane.xlu1 %1941 }
0x1118   :  { %v1944_v9 = vmul.f32 0.0078125, %v1942_v19  ;;  %v1940_v37 = vpop.xlane.xlu0 %1939 }
0x1119   :  { %v1943_v36 = vmul.f32 0.0078125, %v1940_v37 }
0x111a   :  { %v1946_v4 = vsub.f32 %v1938_v29, %v1944_v9 }
0x111b   :  { %v1945_v38 = vsub.f32 %v1937_v30, %v1943_v36  ;;  %v2209_v36 = vld [vmem:[%s4836_s1 + $0x180] sm:$0xff] }
0x111c   :  { %v1948_v50 = vmul.f32 %v1946_v4, %v1946_v4 }
0x111d   :  { %v1947_v39 = vmul.f32 %v1945_v38, %v1945_v38 }
0x111e   :  { %1951 = vadd.xlane.f32.xlu1 %v1948_v50  ;;  %v2193_v50 = vld [vmem:[%s4836_s1 + $0x100] sm:$0xff] }
0x111f   :  { %1949 = vadd.xlane.f32.xlu0 %v1947_v39  ;;  %v2194_v39 = vld [vmem:[%s4836_s1 + $0x108] sm:$0xff] }
0x1120   :  { %v3961_v51 = vpack.c.bf16 %v2194_v39, %v2193_v50  ;;  %v2220_v50 = vld [vmem:[%s4836_s1 + $0x1d8] sm:$0xff] }
0x11ab   :  { %v1952_v55 = vpop.xlane.xlu1 %1951 }
0x11ac   :  { %v1954_v56 = vmul.f32 0.0078125, %v1952_v55  ;;  %v1950_v57 = vpop.xlane.xlu0 %1949  ;;  %v3965_v55 = vpack.c.bf16 %v2196_v54, %v2195_v53  ;;  %v2222_v53 = vld [vmem:[%s4836_s1 + $0x1e8] sm:$0xff]  ;;  %v2205_v54 = vld [vmem:[%s4836_s1 + $0x160] sm:$0xff] }
0x11ad   :  { %v1953_v59 = vmul.f32 0.0078125, %v1950_v57  ;;  %v2182_v57 = vld [vmem:[%s4836_s1 + $0xa8] sm:$0xff] }
0x11ae   :  { %v1956_v61 = vadd.f32 1e-05, %v1954_v56  ;;  %v2181_v56 = vld [vmem:[%s4836_s1 + $0xa0] sm:$0xff] }
0x11af   :  { %v1955_v62 = vadd.f32 1e-05, %v1953_v59  ;;  %v3935_v59 = vpack.c.bf16 %v2182_v57, %v2181_v56  ;;  %v2206_v56 = vld [vmem:[%s4836_s1 + $0x168] sm:$0xff]  ;;  %v2191_v57 = vld [vmem:[%s4836_s1 + $0xf0] sm:$0xff] }
0x11b0   :  { %4131 = vrsqrt.f32 %v1956_v61  ;;  %v2165_v61 = vld [vmem:[%s4836_s1 + $0x20] sm:$0xff] }
0x11b1   :  { %4133 = vrsqrt.f32 %v1955_v62  ;;  %v2166_v62 = vld [vmem:[%s4836_s1 + $0x28] sm:$0xff] }
0x11ba   :  { %v4132_v0 = vpop.eup %4131 }
0x11bb   :  { %v4134_v1 = vpop.eup %4133  ;;  %v1960_v2 = vmul.f32 %v4132_v0, %v1946_v4  ;;  %v2210_v4 = vld [vmem:[%s4836_s1 + $0x188] sm:$0xff]  ;;  %v3937_v0 = vpack.c.bf16 %v2166_v62, %v2165_v61  ;;  %v3985_v61 = vpack.c.bf16 %v2206_v56, %v2205_v54  ;;  %v2245_v54 = vld [vmem:[%s4836_s1 + $0x2a0] sm:$0xff] }
0x11bc   :  { %v1959_v6 = vmul.f32 %v4134_v1, %v1945_v38  ;;  %v3959_v38 = vpack.c.bf16 %v2210_v4, %v2209_v36  ;;  %v2213_v1 = vld [vmem:[%s4836_s1 + $0x1a0] sm:$0xff]  ;;  %v2172_v36 = vld [vmem:[%s4836_s1 + $0x58] sm:$0xff] }
0x11bd   :  { %v1966_v11 = vmul.f32 %v4396_v63, %v1960_v2  ;;  %v2214_v2 = vld [vmem:[%s4836_s1 + $0x1a8] sm:$0xff] }
0x11be   :  { %v1965_v12 = vmul.f32 %v4396_v63, %v1959_v6  ;;  %3960 = vmatprep.subr.bf16.mxu0 %v3959_v38  ;;  %v3967_v6 = vpack.c.bf16 %v2214_v2, %v2213_v1  ;;  %v2219_v38 = vld [vmem:[%s4836_s1 + $0x1d0] sm:$0xff]  ;;  %v2176_v1 = vld [vmem:[%s4836_s1 + $0x78] sm:$0xff] }
0x11bf   :  { %v1972_v15 = vadd.f32 %v4400_v7, %v1966_v11  ;;  %v2197_v11 = vld [vmem:[%s4836_s1 + $0x120] sm:$0xff]  ;;  %v3979_v39 = vpack.c.bf16 %v2220_v50, %v2219_v38  ;;  %v2223_v2 = vld [vmem:[%s4836_s1 + $0x1f0] sm:$0xff]  ;;  %v2258_v50 = vld [vmem:[%s4836_s1 + $0x308] sm:$0xff] }
0x11c0   :  { %v1971_v14 = vadd.f32 %v4400_v7, %v1965_v12  ;;  %v2198_v12 = vld [vmem:[%s4836_s1 + $0x128] sm:$0xff] }
0x11c2   :  { %3409 = vmatprep.mubr.f32.mxu1 %v1971_v14 }
0x11c3   :  { %3410 = vmatmul.mubr.f32.vlgmr.msra.gmra.mrb[14].mxu1 %v1972_v15 }
0x11c4   :  { %3930 = vmatpush3.bf16.msra.mxu1 %v3929_v28  ;;  %v2201_v28 = vld [vmem:[%s4836_s1 + $0x140] sm:$0xff] }
0x11c5   :  { %3932 = vmatprep.subr.bf16.mxu1 %v3931_v42 }
0x11c8   :  { %3934 = vmatpush3.bf16.msra.mxu1 %v3933_v47  ;;  %v2174_v47 = vld [vmem:[%s4836_s1 + $0x68] sm:$0xff] }
0x11c9   :  { %3936 = vmatprep.subr.bf16.mxu1 %v3935_v59  ;;  %v3953_v49 = vpack.c.bf16 %v2174_v47, %v2173_v44  ;;  %v2192_v59 = vld [vmem:[%s4836_s1 + $0xf8] sm:$0xff]  ;;  %v2227_v47 = vld [vmem:[%s4836_s1 + $0x210] sm:$0xff] }
0x11ca   :  { %v3955_v62 = vpack.c.bf16 %v2192_v59, %v2191_v57  ;;  %v2259_v59 = vld [vmem:[%s4836_s1 + $0x310] sm:$0xff] }
0x11cc   :  { %3938 = vmatpush3.bf16.msra.mxu1 %v3937_v0  ;;  %v2175_v0 = vld [vmem:[%s4836_s1 + $0x70] sm:$0xff] }
0x1296   :  { %v3411_v17 = vpop.f32.mrb[14].mxu1 }
0x1297   :  { %v2049_v18 = vadd.f32 %v3411_v17, %v1976_v16  ;;  %v2043_v46 = vpop.f32.mrb[15].mxu1  ;;  %v2167_v17 = vld [vmem:[%s4836_s1 + $0x30] sm:$0xff] }
0x1298   :  { %v2044_v20 = vadd.f32 %v2043_v46, %v1976_v16 }
0x1299   :  { %v2053_v23 = vmax.f32 %v2049_v18, 0.0  ;;  %v2168_v18 = vld [vmem:[%s4836_s1 + $0x38] sm:$0xff] }
0x129a   :  { %v2052_v21 = vmax.f32 %v2044_v20, 0.0  ;;  %v3941_v46 = vpack.c.bf16 %v2168_v18, %v2167_v17  ;;  %v2215_v20 = vld [vmem:[%s4836_s1 + $0x1b0] sm:$0xff]  ;;  %v2242_v17 = vld [vmem:[%s4836_s1 + $0x288] sm:$0xff] }
0x129c   :  { %3444 = vmatprep.mubr.f32.mxu0 %v2052_v21  ;;  %v2216_v21 = vld [vmem:[%s4836_s1 + $0x1b8] sm:$0xff] }
0x129d   :  { %3445 = vmatmul.mubr.f32.vlgmr.msra.gmra.mrb[18].mxu0 %v2053_v23  ;;  %v3971_v23 = vpack.c.bf16 %v2216_v21, %v2215_v20  ;;  %v2274_v20 = vld [vmem:[%s4836_s1 + $0x388] sm:$0xff] }
0x129e   :  { %3962 = vmatpush3.bf16.msra.mxu0 %v3961_v51  ;;  %v2203_v51 = vld [vmem:[%s4836_s1 + $0x150] sm:$0xff] }
0x129f   :  { %3964 = vmatprep.subr.bf16.mxu0 %v3963_v52  ;;  %v3981_v42 = vpack.c.bf16 %v2204_v40, %v2203_v51  ;;  %v2221_v52 = vld [vmem:[%s4836_s1 + $0x1e0] sm:$0xff]  ;;  %v2244_v51 = vld [vmem:[%s4836_s1 + $0x298] sm:$0xff] }
0x12a2   :  { %3966 = vmatpush3.bf16.msra.mxu0 %v3965_v55  ;;  %v3983_v55 = vpack.c.bf16 %v2222_v53, %v2221_v52 }
0x12a3   :  { %3968 = vmatprep.subr.bf16.mxu0 %v3967_v6  ;;  %v3957_v6 = vpack.c.bf16 %v2176_v1, %v2175_v0  ;;  %v2277_v0 = vld [vmem:[%s4836_s1 + $0x3a0] sm:$0xff]  ;;  %v2278_v1 = vld [vmem:[%s4836_s1 + $0x3a8] sm:$0xff] }
0x1370   :  { %v3446_v60 = vpop.f32.mrb[18].mxu0 }
0x1371   :  { %v2130_v24 = vadd.f32 %v3446_v60, %v2057_v33  ;;  %v2124_v34 = vpop.f32.mrb[19].mxu0  ;;  %v2200_v60 = vld [vmem:[%s4836_s1 + $0x138] sm:$0xff] }
0x1372   :  { %v2125_v35 = vadd.f32 %v2124_v34, %v2057_v33  ;;  %v2199_v33 = vld [vmem:[%s4836_s1 + $0x130] sm:$0xff]  ;;  %v2185_v34 = vld [vmem:[%s4836_s1 + $0xc0] sm:$0xff] }
0x1373   :  { %v2134_v25 = vadd.f32 %v2130_v24, %v1972_v15  ;;  %v2183_v15 = vld [vmem:[%s4836_s1 + $0xb0] sm:$0xff]  ;;  %v3973_v24 = vpack.c.bf16 %v2200_v60, %v2199_v33 }
0x1374   :  { %v2133_v13 = vadd.f32 %v2125_v35, %v1971_v14  ;;  %v3969_v14 = vpack.c.bf16 %v2198_v12, %v2197_v11  ;;  %v3939_v16 = vpack.c.bf16 %v2184_v45, %v2183_v15  ;;  %v2186_v35 = vld [vmem:[%s4836_s1 + $0xc8] sm:$0xff]  ;;  %v2224_v11 = vld [vmem:[%s4836_s1 + $0x1f8] sm:$0xff]  ;;  %v2207_v12 = vld [vmem:[%s4836_s1 + $0x170] sm:$0xff] }
0x1375   :  { %2137 = vadd.xlane.f32.xlu1 %v2134_v25  ;;  %v3987_v15 = vpack.c.bf16 %v2224_v11, %v2223_v2  ;;  %v2229_v11 = vld [vmem:[%s4836_s1 + $0x220] sm:$0xff] }
0x1376   :  { %2135 = vadd.xlane.f32.xlu0 %v2133_v13  ;;  %3970 = vmatpush3.bf16.msra.mxu0 %v3969_v14  ;;  %v2208_v14 = vld [vmem:[%s4836_s1 + $0x178] sm:$0xff] }
0x1377   :  { %3940 = vmatprep.subr.bf16.mxu1 %v3939_v16  ;;  %3972 = vmatprep.subr.bf16.mxu0 %v3971_v23  ;;  %v3989_v45 = vpack.c.bf16 %v2208_v14, %v2207_v12  ;;  %v2241_v16 = vld [vmem:[%s4836_s1 + $0x280] sm:$0xff]  ;;  %v2230_v12 = vld [vmem:[%s4836_s1 + $0x228] sm:$0xff] }
0x1378   :  { %3942 = vmatpush3.bf16.msra.mxu1 %v3941_v46  ;;  %v3991_v18 = vpack.c.bf16 %v2242_v17, %v2241_v16  ;;  %v2273_v46 = vld [vmem:[%s4836_s1 + $0x380] sm:$0xff]  ;;  %v4031_v16 = vpack.c.bf16 %v2278_v1, %v2277_v0  ;;  %v2287_v0 = vld [vmem:[%s4836_s1 + $0x3f0] sm:$0xff]  ;;  %v2288_v1 = vld [vmem:[%s4836_s1 + $0x3f8] sm:$0xff] }
0x1379   :  { %v4023_v21 = vpack.c.bf16 %v2274_v20, %v2273_v46  ;;  %v2261_v17 = vld [vmem:[%s4836_s1 + $0x320] sm:$0xff]  ;;  %v4001_v46 = vpack.c.bf16 %v2230_v12, %v2229_v11  ;;  %v2279_v20 = vld [vmem:[%s4836_s1 + $0x3b0] sm:$0xff]  ;;  %v2240_v11 = vld [vmem:[%s4836_s1 + $0x278] sm:$0xff] }
0x137a   :  { %3974 = vmatpush3.bf16.msra.mxu0 %v3973_v24 }
0x137b   :  { %3976 = vmatprep.subr.bf16.mxu0 %v3975_v27 }
0x1402   :  { %v2138_v29 = vpop.xlane.xlu1 %2137 }
0x1403   :  { %v2140_v30 = vmul.f32 0.0078125, %v2138_v29  ;;  %v2136_v31 = vpop.xlane.xlu0 %2135  ;;  %v2202_v29 = vld [vmem:[%s4836_s1 + $0x148] sm:$0xff] }
0x1404   :  { %v2139_v32 = vmul.f32 0.0078125, %v2136_v31  ;;  %v2187_v31 = vld [vmem:[%s4836_s1 + $0xd0] sm:$0xff] }
0x1405   :  { %v4422_v10 = vsub.f32 %v2134_v25, %v2140_v30  ;;  %v3943_v25 = vpack.c.bf16 %v2186_v35, %v2185_v34  ;;  %v3977_v30 = vpack.c.bf16 %v2202_v29, %v2201_v28 }
0x1406   :  { %v4424_v19 = vsub.f32 %v2133_v13, %v2139_v32  ;;  %v2169_v13 = vld [vmem:[%s4836_s1 + $0x40] sm:$0xff]  ;;  %v2188_v32 = vld [vmem:[%s4836_s1 + $0xd8] sm:$0xff] }
0x1407   :  { %v2144_v9 = vmul.f32 %v4422_v10, %v4422_v10  ;;  %v3945_v26 = vpack.c.bf16 %v2170_v58, %v2169_v13  ;;  %3944 = vmatprep.subr.bf16.mxu1 %v3943_v25  ;;  %3978 = vmatpush3.bf16.msra.mxu0 %v3977_v30  ;;  %v4187_v25 = vmov 1966171168  }
0x1408   :  { %v2143_v37 = vmul.f32 %v4424_v19, %v4424_v19  ;;  %3980 = vmatprep.subr.bf16.mxu0 %v3979_v39  ;;  %v2298_v13 = vunpack.c.l.s4 %v4187_v25  ;;  %v2243_v39 = vld [vmem:[%s4836_s1 + $0x290] sm:$0xff] }
0x1409   :  { %2147 = vadd.xlane.f32.xlu1 %v2144_v9  ;;  %3946 = vmatpush3.bf16.msra.mxu1 %v3945_v26  ;;  %v3947_v9 = vpack.c.bf16 %v2188_v32, %v2187_v31  ;;  %v3995_v53 = vpack.c.bf16 %v2244_v51, %v2243_v39  ;;  %v2253_v51 = vld [vmem:[%s4836_s1 + $0x2e0] sm:$0xff] }
0x140a   :  { %2145 = vadd.xlane.f32.xlu0 %v2143_v37  ;;  %v2171_v37 = vld [vmem:[%s4836_s1 + $0x50] sm:$0xff]  ;;  %v2299_v27 = vunpack.c.0.s8 %v2298_v13 }
0x140b   :  { %v3949_v4 = vpack.c.bf16 %v2172_v36, %v2171_v37  ;;  %3948 = vmatprep.subr.bf16.mxu1 %v3947_v9  ;;  %3982 = vmatpush3.bf16.msra.mxu0 %v3981_v42  ;;  %v2275_v42 = vld [vmem:[%s4836_s1 + $0x390] sm:$0xff] }
0x140c   :  { %3984 = vmatprep.subr.bf16.mxu0 %v3983_v55  ;;  %v4629_v32 = vsub.s32 %v2299_v27, %v4257_v8  ;;  %v2246_v55 = vld [vmem:[%s4836_s1 + $0x2a8] sm:$0xff]  ;;  %v4027_v57 = vpack.c.bf16 %v2276_v43, %v2275_v42  ;;  %v2263_v13 = vld [vmem:[%s4836_s1 + $0x330] sm:$0xff]  ;;  %v2268_v43 = vld [vmem:[%s4836_s1 + $0x358] sm:$0xff] }
0x140d   :  { %3950 = vmatpush3.bf16.msra.mxu1 %v3949_v4  ;;  %v2267_v42 = vld [vmem:[%s4836_s1 + $0x350] sm:$0xff] }
0x140e   :  { %3952 = vmatprep.subr.bf16.mxu1 %v3951_v48  ;;  %v2228_v48 = vld [vmem:[%s4836_s1 + $0x218] sm:$0xff] }
0x140f   :  { %3986 = vmatpush3.bf16.msra.mxu0 %v3985_v61  ;;  %v2260_v61 = vld [vmem:[%s4836_s1 + $0x318] sm:$0xff] }
0x1410   :  { %3988 = vmatprep.subr.bf16.mxu0 %v3987_v15  ;;  %v4029_v14 = vpack.c.bf16 %v2260_v61, %v2259_v59  ;;  %v2247_v15 = vld [vmem:[%s4836_s1 + $0x2b0] sm:$0xff]  ;;  %v2269_v59 = vld [vmem:[%s4836_s1 + $0x360] sm:$0xff]  ;;  %v2270_v61 = vld [vmem:[%s4836_s1 + $0x368] sm:$0xff] }
0x1411   :  { %3954 = vmatpush3.bf16.msra.mxu1 %v3953_v49  ;;  %v4049_v12 = vpack.c.bf16 %v2270_v61, %v2269_v59 }
0x1412   :  { %3956 = vmatprep.subr.bf16.mxu1 %v3955_v62  ;;  %v3997_v62 = vpack.c.bf16 %v2228_v48, %v2227_v47  ;;  %v2285_v47 = vld [vmem:[%s4836_s1 + $0x3e0] sm:$0xff]  ;;  %v2286_v48 = vld [vmem:[%s4836_s1 + $0x3e8] sm:$0xff] }
0x1413   :  { %3990 = vmatpush3.bf16.msra.mxu0 %v3989_v45  ;;  %v2248_v45 = vld [vmem:[%s4836_s1 + $0x2b8] sm:$0xff] }
0x1414   :  { %4024 = vmatprep.subr.bf16.mxu0 %v4023_v21  ;;  %v2280_v21 = vld [vmem:[%s4836_s1 + $0x3b8] sm:$0xff] }
0x1415   :  { %3958 = vmatpush3.bf16.msra.mxu1 %v3957_v6  ;;  %v3999_v6 = vpack.c.bf16 %v2246_v55, %v2245_v54  ;;  %v4035_v25 = vpack.c.bf16 %v2280_v21, %v2279_v20  ;;  %v4045_v54 = vpack.c.bf16 %v2268_v43, %v2267_v42  ;;  %v2255_v55 = vld [vmem:[%s4836_s1 + $0x2f0] sm:$0xff] }
0x1416   :  { %3992 = vmatprep.subr.bf16.mxu1 %v3991_v18  ;;  %v2262_v18 = vld [vmem:[%s4836_s1 + $0x328] sm:$0xff] }
0x1496   :  { %v2148_v23 = vpop.xlane.xlu1 %2147 }
0x1497   :  { %v2150_v33 = vmul.f32 0.0078125, %v2148_v23  ;;  %v2146_v60 = vpop.xlane.xlu0 %2145  ;;  %v4003_v23 = vpack.c.bf16 %v2248_v45, %v2247_v15  ;;  %v2271_v15 = vld [vmem:[%s4836_s1 + $0x370] sm:$0xff]  ;;  %v2272_v45 = vld [vmem:[%s4836_s1 + $0x378] sm:$0xff] }
0x1498   :  { %v2149_v24 = vmul.f32 0.0078125, %v2146_v60  ;;  %v2232_v60 = vld [vmem:[%s4836_s1 + $0x238] sm:$0xff] }
0x1499   :  { %v2152_v34 = vadd.f32 1e-05, %v2150_v33  ;;  %v2231_v33 = vld [vmem:[%s4836_s1 + $0x230] sm:$0xff] }
0x149a   :  { %v2151_v35 = vadd.f32 1e-05, %v2149_v24  ;;  %v4033_v24 = vpack.c.bf16 %v2262_v18, %v2261_v17  ;;  %v4053_v17 = vpack.c.bf16 %v2272_v45, %v2271_v15 }
0x149b   :  { %4135 = vrsqrt.f32 %v2152_v34  ;;  %v2249_v34 = vld [vmem:[%s4836_s1 + $0x2c0] sm:$0xff] }
0x149c   :  { %4137 = vrsqrt.f32 %v2151_v35  ;;  %v2250_v35 = vld [vmem:[%s4836_s1 + $0x2c8] sm:$0xff] }
0x149d   :  { %v4007_v27 = vpack.c.bf16 %v2250_v35, %v2249_v34 }
0x14a5   :  { %v4136_v58 = vpop.eup %4135 }
0x14a6   :  { %v4138_v26 = vpop.eup %4137  ;;  %v2156_v3 = vmul.f32 %v4136_v58, %v4422_v10  ;;  %v2264_v58 = vld [vmem:[%s4836_s1 + $0x338] sm:$0xff] }
0x14a7   :  { %v2155_v22 = vmul.f32 %v4138_v26, %v4424_v19  ;;  %v2225_v19 = vld [vmem:[%s4836_s1 + $0x200] sm:$0xff]  ;;  %v4005_v26 = vpack.c.bf16 %v2232_v60, %v2231_v33 }
0x14a8   :  { %v2158_v28 = vmul.f32 %v2156_v3, %v4396_v63  ;;  %v2281_v3 = vld [vmem:[%s4836_s1 + $0x3c0] sm:$0xff] }
0x14a9   :  { %v2157_v29 = vmul.f32 %v2155_v22, %v4396_v63  ;;  %v2226_v63 = vld [vmem:[%s4836_s1 + $0x208] sm:$0xff] }
0x14aa   :  { %v2160_v30 = vadd.f32 %v2158_v28, %v4400_v7  ;;  %v3993_v41 = vpack.c.bf16 %v2226_v63, %v2225_v19  ;;  %v2282_v22 = vld [vmem:[%s4836_s1 + $0x3c8] sm:$0xff]  ;;  %v2233_v28 = vld [vmem:[%s4836_s1 + $0x240] sm:$0xff] }
0x14ab   :  { %v2159_v31 = vadd.f32 %v2157_v29, %v4400_v7  ;;  %v2257_v7 = vld [vmem:[%s4836_s1 + $0x300] sm:$0xff]  ;;  %v2234_v29 = vld [vmem:[%s4836_s1 + $0x248] sm:$0xff] }
0x14ac   :  { %v4025_v52 = vpack.c.bf16 %v2258_v50, %v2257_v7  ;;  %v2266_v19 = vld [vmem:[%s4836_s1 + $0x348] sm:$0xff]  ;;  %v4009_v63 = vpack.c.bf16 %v2234_v29, %v2233_v28  ;;  %v2236_v50 = vld [vmem:[%s4836_s1 + $0x258] sm:$0xff] }
0x14ad   :  { %v2295_v9 = vcombine.low %v2159_v31, %v2160_v30  ;;  %v2296_v37 = vcombine.high %v2159_v31, %v2160_v30  ;;  %v4037_v30 = vpack.c.bf16 %v2264_v58, %v2263_v13  ;;  %v2251_v31 = vld [vmem:[%s4836_s1 + $0x2d0] sm:$0xff] }
0x14af   :  { %v2303_v36 = vrot.slane %v2295_v9, %v4629_v32  ;;  %v4633_v10 = vrot.slane %v2296_v37, %v4629_v32  ;;  %v2252_v9 = vld [vmem:[%s4836_s1 + $0x2d8] sm:$0xff]  ;;  %v4039_v37 = vpack.c.bf16 %v2282_v22, %v2281_v3 }
0x14b0   :  { %v4011_v7 = vpack.c.bf16 %v2252_v9, %v2251_v31 }
0x14b1   :  { %v2311_v4 = vcombine.high %v2303_v36, %v2303_v36  ;;  %v2312_v8 = vcombine.high %v4633_v10, %v4633_v10  ;;  %v2319_v38 = vrot.slane %v2303_v36, %v4629_v32  ;;  %v2265_v36 = vld [vmem:[%s4836_s1 + $0x340] sm:$0xff]  ;;  %v2326_v18 = vrot.slane %v4633_v10, %v4629_v32 }
0x14b2   :  { %v4041_v39 = vpack.c.bf16 %v2266_v19, %v2265_v36 }
0x14b3   :  { %v2333_v40 = vrot.slane %v2311_v4, %v4629_v32  ;;  %v2340_v44 = vrot.slane %v2312_v8, %v4629_v32  ;;  %v2341_v56 = vcombine.high %v2319_v38, %v2319_v38  ;;  %v2283_v4 = vld [vmem:[%s4836_s1 + $0x3d0] sm:$0xff]  ;;  %v2284_v8 = vld [vmem:[%s4836_s1 + $0x3d8] sm:$0xff] }
0x14b5   :  { %2417 = vmatprep.mubr.f32.mxu1 %v2333_v40  ;;  %v2343_v49 = vcombine.high %v2333_v40, %v2333_v40  ;;  %v2344_v2 = vcombine.high %v2340_v44, %v2340_v44  ;;  %v2254_v40 = vld [vmem:[%s4836_s1 + $0x2e8] sm:$0xff] }
0x14b6   :  { %2418 = vmatmul.mubr.f32.vlgmr.msra.gmra.mrb[16].mxu1 %v2319_v38  ;;  %v2235_v38 = vld [vmem:[%s4836_s1 + $0x250] sm:$0xff] }
0x14b7   :  { %3994 = vmatpush3.bf16.msra.mxu1 %v3993_v41  ;;  %2487 = vmatprep.mubr.f32.mxu0 %v2343_v49  ;;  %v4043_v41 = vpack.c.bf16 %v2284_v8, %v2283_v4  ;;  %v4015_v49 = vpack.c.bf16 %v2254_v40, %v2253_v51 }
0x14b8   :  { %2557 = vmatprep.mubr.f32.mxu1 %v2340_v44  ;;  %2488 = vmatmul.mubr.f32.vlgmr.msra.gmra.mrb[20].mxu0 %v2341_v56  ;;  %v4013_v44 = vpack.c.bf16 %v2236_v50, %v2235_v38  ;;  %v2256_v56 = vld [vmem:[%s4836_s1 + $0x2f8] sm:$0xff] }
0x14b9   :  { %4026 = vmatpush3.bf16.msra.mxu0 %v4025_v52  ;;  %3996 = vmatprep.subr.bf16.mxu1 %v3995_v53  ;;  %v2237_v52 = vld [vmem:[%s4836_s1 + $0x260] sm:$0xff]  ;;  %v2238_v53 = vld [vmem:[%s4836_s1 + $0x268] sm:$0xff] }
0x14ba   :  { %2627 = vmatprep.mubr.f32.mxu0 %v2344_v2  ;;  %4028 = vmatprep.subr.bf16.mxu0 %v4027_v57  ;;  %v4047_v57 = vpack.c.bf16 %v2286_v48, %v2285_v47  ;;  %v4019_v2 = vpack.c.bf16 %v2256_v56, %v2255_v55 }
0x14bb   :  { %3998 = vmatpush3.bf16.msra.mxu1 %v3997_v62  ;;  %v4017_v62 = vpack.c.bf16 %v2238_v53, %v2237_v52 }
0x14bc   :  { %4000 = vmatprep.subr.bf16.mxu1 %v3999_v6  ;;  %v2239_v6 = vld [vmem:[%s4836_s1 + $0x270] sm:$0xff]  ;;  %s4188_s1 = smov [#allocation4]  }
0x14bd   :  { %4030 = vmatpush3.bf16.msra.mxu0 %v4029_v14  ;;  %v4051_v14 = vpack.c.bf16 %v2288_v1, %v2287_v0  ;;  %s2641_s22 = sshll.u32 %s4188_s1, 4  ;;  %s2642_s22 = int_to_ptr.vmem [resolvable:$true] %s2641_s22 }
0x14be   :  { %4032 = vmatprep.subr.bf16.mxu0 %v4031_v16  ;;  %v4021_v16 = vpack.c.bf16 %v2240_v11, %v2239_v6  ;;  %s4139_s2 = scalar_lea.vmem %s2642_s22, 32  ;;  %p4144_p1 = scmp.lt.s32.totalorder %s2642_s22, %s2642_s22 }
0x14bf   :  { %4002 = vmatpush3.bf16.msra.mxu1 %v4001_v46  ;;  %v2342_v46 = vcombine.high %v2326_v18, %v2326_v18  ;;  %p4140_p0 = scmp.ne.s32.totalorder %s2642_s22, %s4139_s2  ;;  %p4145_p2 = scmp.lt.s32.totalorder %s4139_s2, %s4139_s2 }
0x14c0   :  { %4004 = vmatprep.subr.bf16.mxu1 %v4003_v23 }
0x14c1   :  { %4034 = vmatpush3.bf16.msra.mxu0 %v4033_v24  ;;  %p4146_p3 = por %p4145_p2, %p4144_p1 }
0x14c2   :  { %4036 = vmatprep.subr.bf16.mxu0 %v4035_v25 }
0x14c3   :  { %4006 = vmatpush3.bf16.msra.mxu1 %v4005_v26  ;;  %p4147_p4 = pnand %p4146_p3, %p4140_p0 }
0x14c4   :  { %4008 = vmatprep.subr.bf16.mxu1 %v4007_v27 }
0x14c5   :  { %4038 = vmatpush3.bf16.msra.mxu0 %v4037_v30 }
0x14c6   :  { %4040 = vmatprep.subr.bf16.mxu0 %v4039_v37 }
0x14c7   :  { %4010 = vmatpush3.bf16.msra.mxu1 %v4009_v63 }
0x14c8   :  { %4012 = vmatprep.subr.bf16.mxu1 %v4011_v7 }
0x14c9   :  { %4042 = vmatpush3.bf16.msra.mxu0 %v4041_v39 }
0x14ca   :  { %4044 = vmatprep.subr.bf16.mxu0 %v4043_v41 }
0x14cb   :  { %4014 = vmatpush3.bf16.msra.mxu1 %v4013_v44 }
0x14cc   :  { %4016 = vmatprep.subr.bf16.mxu1 %v4015_v49 }
0x14cd   :  { %4046 = vmatpush3.bf16.msra.mxu0 %v4045_v54 }
0x14ce   :  { %4048 = vmatprep.subr.bf16.mxu0 %v4047_v57 }
0x14cf   :  { %4018 = vmatpush3.bf16.msra.mxu1 %v4017_v62 }
0x14d0   :  { %4020 = vmatprep.subr.bf16.mxu1 %v4019_v2 }
0x14d1   :  { %4050 = vmatpush3.bf16.msra.mxu0 %v4049_v12 }
0x14d2   :  { %4052 = vmatprep.subr.bf16.mxu0 %v4051_v14 }
0x14d3   :  { %4022 = vmatpush3.bf16.msra.mxu1 %v4021_v16 }
0x14d5   :  { %4054 = vmatpush3.bf16.msra.mxu0 %v4053_v17 }
0x14d6   :  { %2558 = vmatmul.mubr.f32.vlgmr.msra.gmra.mrb[18].mxu1 %v2326_v18 }
0x14d8   :  { %2628 = vmatmul.mubr.f32.vlgmr.msra.gmra.mrb[22].mxu0 %v2342_v46 }
0x1589   :  { %v2919_v20 = vpop.f32.mrb[16].mxu1 }
0x158a   :  { %v2920_v21 = vpop.f32.mrb[17].mxu1 }
0x158b   :  { %v2921_v23 = vadd.f32 %v2920_v21, %v2919_v20  ;;  %v2954_v33 = vpop.f32.mrb[20].mxu0 }
0x158c   :  { %v2955_v60 = vpop.f32.mrb[21].mxu0 }
0x158d   :  { %v2420_v24 = vadd.f32 %v2921_v23, %v4248_v5  ;;  %v2956_v34 = vadd.f32 %v2955_v60, %v2954_v33 }
0x158f   :  { %v2490_v35 = vadd.f32 %v2956_v34, %v2420_v24 }
0x15a9   :  { %v2989_v25 = vpop.f32.mrb[18].mxu1 }
0x15aa   :  { %v2990_v13 = vpop.f32.mrb[19].mxu1 }
0x15ab   :  { %v2991_v58 = vadd.f32 %v2990_v13, %v2989_v25  ;;  %v3024_v26 = vpop.f32.mrb[22].mxu0 }
0x15ac   :  { %v3025_v3 = vpop.f32.mrb[23].mxu0 }
0x15ad   :  { %v2560_v32 = vadd.f32 %v2991_v58, %v2490_v35  ;;  %v3026_v10 = vadd.f32 %v3025_v3, %v3024_v26 }
0x15af   :  { %v2630_v22 = vadd.f32 %v3026_v10, %v2560_v32 }
0x15b1   :  { %2634 = vst.msk [vmem:[#allocation4] sm:$0x3] %vm2633_vm0, %v2630_v22 }
0x15b2   :  { %4150 = shalt.err (!%p4147_p4)
}
0x15b3   :  { %s4151_s23 = scalar_lea.hbm %s4838_s3, 32 }
0x15b4   :  { %p4152_p5 = scmp.ne.s32.totalorder %s4838_s3, %s4151_s23  ;;  %p4155_p6 = scmp.lt.u32.totalorder %s4151_s23, %s4838_s3 }
0x15b6   :  { %p4157_p7 = pnand %p4155_p6, %p4152_p5 }
0x15b8   :  { %4160 = shalt.err (!%p4157_p7)
}
0x15b9   :  { %2644 = dma.vmem_to_hbm [thread:$0]  %s2642_s22, 32, %s4838_s3, [#allocation5]  }
0x15ba   :  { %4167 = dma.done.wait [#allocation5], 32  }
0x15bb   :  { %4168 = vsyncadd [#allocation5], 4294967264 }
0x15bc   :  { %2648 = vsyncpa [#allocation5], 1 }
0x15bd   :  { %2649 = vsyncmov [#allocation3] }
0x15c0   :  { %s2650_s30 = vpop.sfrf %2649 }
0x15c1   :  { %p2669_p8 = scmp.ne.s32.totalorder %s2650_s30, 0 }
0x15c3   :  { %2654 = shalt.err (%p2669_p8)  }
0x15c4   :  { %2656 = vsyncmov [#allocation3 + $0x1] }
0x15c7   :  { %s2657_s4 = vpop.sfrf %2656 }
0x15c8   :  { %p2670_p9 = scmp.ne.s32.totalorder %s2657_s4, 0 }
0x15ca   :  { %2661 = shalt.err (%p2670_p9)  }

</bundles_post_ra>
